<compile_context>
chip_gen: v7x
topology: tpu7x:2x2x1
jax: 0.10.0
libtpu: 0.0.40
codegen_flags: <defaults>
</compile_context>

<pallas_src>
import functools

import jax
import jax.numpy as jnp
from jax import lax
from jax.experimental import pallas as pl
from jax.experimental.pallas import tpu as pltpu


def _pick_tile(t, target):
    """Largest multiple of 8 that divides t and is <= target; else t (no tiling)."""
    if t <= target:
        return t
    cand = (target // 8) * 8
    while cand >= 8:
        if t % cand == 0:
            return cand
        cand -= 8
    return t


def _default_vmem_limit():
    try:
        cap = pltpu.get_tpu_info().vmem_capacity_bytes
    except Exception:
        cap = 128 << 20
    # Leave ~25% headroom for double-buffered blocks & compiler scratch.
    return int(min(100 << 20, (cap * 3) // 4))


def _flash_self_attention_kernel(xq_ref, xkv_ref, wq_ref, wkv_ref, o_ref,
                                 q_scr, m_scr, l_scr, acc_scr,
                                 *, heads, embed_size):
    # xq_ref : (1, TQ,  D)   f32  -- rows of x for this query tile
    # xkv_ref: (1, TKV, D)   f32  -- rows of x for this kv tile
    # wq_ref : (D, H*E)      bf16 -- Q weight (1/sqrt(E) pre-folded)
    # wkv_ref: (D, 2*H*E)    bf16 -- [K | V] weights
    # o_ref  : (1, TQ, H*E)  f32  -- module output layout, written at last kv step
    # q_scr  : (TQ, H*E)     bf16 -- projected queries, persists across kv steps
    # m_scr, l_scr : (H, TQ, 1) f32 ; acc_scr : (H, TQ, E) f32
    h, e = heads, embed_size
    he = h * e
    ki = pl.program_id(2)

    @pl.when(ki == 0)
    def _init():
        xq = xq_ref[0].astype(jnp.bfloat16)                       # (TQ, D)
        q = jnp.dot(xq, wq_ref[...], preferred_element_type=jnp.float32)
        q_scr[...] = q.astype(jnp.bfloat16)                       # (TQ, H*E)
        m_scr[...] = jnp.full_like(m_scr, -jnp.inf)
        l_scr[...] = jnp.zeros_like(l_scr)
        acc_scr[...] = jnp.zeros_like(acc_scr)

    # K/V projection for this kv tile: one wide (TKV,D)x(D,2*H*E) MXU matmul,
    # f32 accumulation, immediately narrowed to bf16 (operands of later matmuls).
    xkv = xkv_ref[0].astype(jnp.bfloat16)                         # (TKV, D)
    kv = jnp.dot(xkv, wkv_ref[...], preferred_element_type=jnp.float32)
    kv = kv.astype(jnp.bfloat16)                                  # (TKV, 2*H*E)

    for hi in range(h):                                           # static unroll
        qh = q_scr[:, hi * e:(hi + 1) * e]                        # (TQ, E)  bf16
        kh = kv[:, hi * e:(hi + 1) * e]                           # (TKV, E) bf16
        vh = kv[:, he + hi * e: he + (hi + 1) * e]                # (TKV, E) bf16

        # scores = q @ k^T without materializing a transpose of k.
        s = lax.dot_general(qh, kh, (((1,), (1,)), ((), ())),
                            preferred_element_type=jnp.float32)   # (TQ, TKV)

        # Online (flash) softmax update, all in f32.
        m_prev = m_scr[hi]                                        # (TQ, 1)
        m_new = jnp.maximum(m_prev, jnp.max(s, axis=-1, keepdims=True))
        alpha = jnp.exp(m_prev - m_new)
        p = jnp.exp(s - m_new)                                    # (TQ, TKV)
        l_scr[hi] = alpha * l_scr[hi] + jnp.sum(p, axis=-1, keepdims=True)
        acc_scr[hi] = alpha * acc_scr[hi] + jnp.dot(
            p.astype(jnp.bfloat16), vh, preferred_element_type=jnp.float32)
        m_scr[hi] = m_new

    @pl.when(ki == pl.num_programs(2) - 1)
    def _finalize():
        # Normalize the (TQ, E) accumulators (not the (TQ, TKV) probabilities),
        # exact reciprocal, then one lane-dense (TQ, H*E) store.
        outs = [acc_scr[hi] * pl.reciprocal(l_scr[hi], approx=False)
                for hi in range(h)]
        o_ref[0] = jnp.concatenate(outs, axis=-1).astype(o_ref.dtype)


def self_attention_pallas(x, wq, wk, wv, heads, embed_size,
                          *, q_tile=512, kv_tile=512):
    """x: (B, T, D) f32. wq/wk/wv: PyTorch nn.Linear weights, shape (H*E, D)."""
    b, t, d = x.shape
    h, e = heads, embed_size
    he = h * e
    assert wq.shape == (he, d) and wk.shape == (he, d) and wv.shape == (he, d)

    # nn.Linear computes x @ W.T. Fold both e^(-1/4) scalings (q and k) into the
    # Q weight in f32 BEFORE the bf16 cast; cast static weights once.
    scale = 1.0 / float(e) ** 0.5
    w_q = (wq.T * scale).astype(jnp.bfloat16)                     # (D, H*E)
    w_kv = jnp.concatenate([wk.T, wv.T], axis=1).astype(jnp.bfloat16)  # (D, 2*H*E)

    tq = _pick_tile(t, q_tile)
    tkv = _pick_tile(t, kv_tile)
    n_q, n_kv = t // tq, t // tkv
    grid = (b, n_q, n_kv)

    vmem_limit = _default_vmem_limit()

    flops = int(b * (2 * t * d * he                 # q projection
                     + n_q * 2 * t * d * 2 * he     # k/v projection (per q tile)
                     + 4 * t * t * he))             # scores + PV
    transcendentals = int(b * h * t * t)
    bytes_accessed = int(b * t * d * 4 * (1 + n_q) + d * 3 * he * 2 + b * t * he * 4)

    kernel = functools.partial(_flash_self_attention_kernel,
                               heads=h, embed_size=e)

    def build(single_buffer_weight):
        w_extra = ({"pipeline_mode": pl.Buffered(1)}
                   if single_buffer_weight else {})
        in_specs = [
            pl.BlockSpec((1, tq, d), lambda bi, qi, ki: (bi, qi, 0)),
            pl.BlockSpec((1, tkv, d), lambda bi, qi, ki: (bi, ki, 0)),
            pl.BlockSpec((d, he), lambda bi, qi, ki: (0, 0), **w_extra),
            pl.BlockSpec((d, 2 * he), lambda bi, qi, ki: (0, 0), **w_extra),
        ]
        return pl.pallas_call(
            kernel,
            out_shape=jax.ShapeDtypeStruct((b, t, he), jnp.float32),
            grid_spec=pltpu.PrefetchScalarGridSpec(
                num_scalar_prefetch=0,
                grid=grid,
                in_specs=in_specs,
                out_specs=pl.BlockSpec((1, tq, he), lambda bi, qi, ki: (bi, qi, 0)),
                scratch_shapes=[
                    pltpu.VMEM((tq, he), jnp.bfloat16),   # projected q
                    pltpu.VMEM((h, tq, 1), jnp.float32),  # running max m
                    pltpu.VMEM((h, tq, 1), jnp.float32),  # running sum l
                    pltpu.VMEM((h, tq, e), jnp.float32),  # output accumulator
                ],
            ),
            compiler_params=pltpu.CompilerParams(
                dimension_semantics=("parallel", "parallel", "arbitrary"),
                vmem_limit_bytes=vmem_limit,
            ),
            cost_estimate=pl.CostEstimate(
                flops=flops,
                transcendentals=transcendentals,
                bytes_accessed=bytes_accessed,
            ),
        )

    try:
        return jax.block_until_ready(build(True)(x, x, w_q, w_kv))
    except Exception:
        # Fall back to default (double-buffered) weight blocks if this JAX
        # version rejects pipeline_mode / Buffered(1).
        return jax.block_until_ready(build(False)(x, x, w_q, w_kv))


def self_attention_ref(x, wq, wk, wv, heads, embed_size):
    """Pure-JAX f32 reference mirroring the PyTorch forward."""
    b, t, d = x.shape
    h, e = heads, embed_size
    keys = (x @ wk.T).reshape(b, t, h, e)
    queries = (x @ wq.T).reshape(b, t, h, e)
    values = (x @ wv.T).reshape(b, t, h, e)
    keys = jnp.transpose(keys, (0, 2, 1, 3)).reshape(b * h, t, e)
    queries = jnp.transpose(queries, (0, 2, 1, 3)).reshape(b * h, t, e)
    values = jnp.transpose(values, (0, 2, 1, 3)).reshape(b * h, t, e)
    scale = float(e) ** 0.25
    queries = queries / scale
    keys = keys / scale
    dot = jnp.einsum("bqe,bke->bqk", queries, keys)
    dot = jax.nn.softmax(dot, axis=2)
    out = jnp.einsum("bqk,bke->bqe", dot, values).reshape(b, h, t, e)
    return jnp.transpose(out, (0, 2, 1, 3)).reshape(b, t, h * e)


if __name__ == "__main__":
    def run_case(b, t, d_in, heads, emb, q_tile, kv_tile):
        key = jax.random.PRNGKey(0)
        kx, kq, kk, kv = jax.random.split(key, 4)
        x = jax.random.normal(kx, (b, t, d_in), dtype=jnp.float32)
        w_scale = 1.0 / (d_in ** 0.5)
        wq = jax.random.uniform(kq, (heads * emb, d_in), jnp.float32, -w_scale, w_scale)
        wk = jax.random.uniform(kk, (heads * emb, d_in), jnp.float32, -w_scale, w_scale)
        wv = jax.random.uniform(kv, (heads * emb, d_in), jnp.float32, -w_scale, w_scale)

        out = self_attention_pallas(x, wq, wk, wv, heads, emb,
                                    q_tile=q_tile, kv_tile=kv_tile)
        out = jax.block_until_ready(out)
        ref = self_attention_ref(x, wq, wk, wv, heads, emb)
        assert out.shape == (b, t, heads * emb)
        # bf16 MXU operands with f32 accumulation vs the pure-f32 reference.
        err = float(jnp.max(jnp.abs(out - ref)))
        assert jnp.allclose(out, ref, atol=2e-2, rtol=2e-2), err

    # Small shapes matching the module spec: batch=2, seq=8, input_size=32,
    # heads=2, embed_size=16 (single tile per axis).
    run_case(2, 8, 32, 2, 16, q_tile=512, kv_tile=512)
    # Second small case that actually exercises the flash q/kv tiling path
    # (2 query tiles x 4 kv tiles of online softmax).
    run_case(2, 32, 32, 2, 16, q_tile=16, kv_tile=8)

    print("KERNEL_OK")
</pallas_src>

<mosaic_0001>
module attributes {stable_mosaic.version = 11 : i64} {
  func.func @_flash_self_attention_kernel(%arg0: i32, %arg1: i32, %arg2: i32, %arg3: memref<1x8x32xf32, #tpu.memory_space<vmem>>, %arg4: memref<1x8x32xf32, #tpu.memory_space<vmem>>, %arg5: memref<32x32xbf16, #tpu.memory_space<vmem>>, %arg6: memref<32x64xbf16, #tpu.memory_space<vmem>>, %arg7: memref<1x8x32xf32, #tpu.memory_space<vmem>>, %arg8: memref<8x32xbf16, #tpu.memory_space<vmem>>, %arg9: memref<2x8x1xf32, #tpu.memory_space<vmem>>, %arg10: memref<2x8x1xf32, #tpu.memory_space<vmem>>, %arg11: memref<2x8x16xf32, #tpu.memory_space<vmem>>) attributes {dimension_semantics = [#tpu.dimension_semantics<parallel>, #tpu.dimension_semantics<parallel>, #tpu.dimension_semantics<arbitrary>], iteration_bounds = array<i64: 2, 1, 1>, scalar_prefetch = 0 : i64, scratch_operands = 4 : i64, tpu.core_type = #tpu.core_type<tc>, window_params = [{transform_indices = @transform_0, window_bounds = array<i64: 1, 8, 32>}, {transform_indices = @transform_1, window_bounds = array<i64: 1, 8, 32>}, {pipeline_mode = #tpu.pipeline_mode<synchronous>, transform_indices = @transform_2, window_bounds = array<i64: 32, 32>}, {pipeline_mode = #tpu.pipeline_mode<synchronous>, transform_indices = @transform_3, window_bounds = array<i64: 32, 64>}, {transform_indices = @transform_4, window_bounds = array<i64: 1, 8, 32>}]} {
    %c0_i32 = arith.constant 0 : i32
    %0 = arith.cmpi eq, %arg2, %c0_i32 : i32
    %1 = arith.extui %0 : i1 to i32
    %c0_i32_0 = arith.constant 0 : i32
    %2 = arith.cmpi ne, %1, %c0_i32_0 : i32
    scf.if %2 {
      %c0_53 = arith.constant 0 : index
      %c0_54 = arith.constant 0 : index
      %c0_55 = arith.constant 0 : index
      %84 = vector.load %arg3[%c0_53, %c0_54, %c0_55] : memref<1x8x32xf32, #tpu.memory_space<vmem>>, vector<1x8x32xf32>
      %85 = vector.shape_cast %84 : vector<1x8x32xf32> to vector<8x32xf32>
      %86 = arith.truncf %85 : vector<8x32xf32> to vector<8x32xbf16>
      %c0_56 = arith.constant 0 : index
      %c0_57 = arith.constant 0 : index
      %87 = vector.load %arg5[%c0_56, %c0_57] : memref<32x32xbf16, #tpu.memory_space<vmem>>, vector<32x32xbf16>
      %cst_58 = arith.constant dense<0.000000e+00> : vector<8x32xf32>
      %88 = tpu.matmul %86, %87, %cst_58 {dimension_numbers = #tpu.dot_dimension_numbers<[1], [0], [0], [1], [0, 0, 1, 1], [], []>} : vector<8x32xbf16>, vector<32x32xbf16>, vector<8x32xf32> -> vector<8x32xf32>
      %89 = arith.truncf %88 : vector<8x32xf32> to vector<8x32xbf16>
      %c0_59 = arith.constant 0 : index
      %c0_60 = arith.constant 0 : index
      %90 = vector.load %arg8[%c0_59, %c0_60] : memref<8x32xbf16, #tpu.memory_space<vmem>>, vector<8x32xbf16>
      tpu.vector_store %arg8[%c0_59, %c0_60], %89 {strides = array<i32>} : memref<8x32xbf16, #tpu.memory_space<vmem>>, vector<8x32xbf16>,
      %cst_61 = arith.constant 0xFF800000 : f32
      %91 = vector.broadcast %cst_61 : f32 to vector<2x8x1xf32>
      %c0_62 = arith.constant 0 : index
      %c0_63 = arith.constant 0 : index
      %c0_64 = arith.constant 0 : index
      %92 = vector.load %arg9[%c0_62, %c0_63, %c0_64] : memref<2x8x1xf32, #tpu.memory_space<vmem>>, vector<2x8x1xf32>
      tpu.vector_store %arg9[%c0_62, %c0_63, %c0_64], %91 {strides = array<i32>} : memref<2x8x1xf32, #tpu.memory_space<vmem>>, vector<2x8x1xf32>,
      %cst_65 = arith.constant 0.000000e+00 : f32
      %93 = vector.broadcast %cst_65 : f32 to vector<2x8x1xf32>
      %c0_66 = arith.constant 0 : index
      %c0_67 = arith.constant 0 : index
      %c0_68 = arith.constant 0 : index
      %94 = vector.load %arg10[%c0_66, %c0_67, %c0_68] : memref<2x8x1xf32, #tpu.memory_space<vmem>>, vector<2x8x1xf32>
      tpu.vector_store %arg10[%c0_66, %c0_67, %c0_68], %93 {strides = array<i32>} : memref<2x8x1xf32, #tpu.memory_space<vmem>>, vector<2x8x1xf32>,
      %cst_69 = arith.constant 0.000000e+00 : f32
      %95 = vector.broadcast %cst_69 : f32 to vector<2x8x16xf32>
      %c0_70 = arith.constant 0 : index
      %c0_71 = arith.constant 0 : index
      %c0_72 = arith.constant 0 : index
      %96 = vector.load %arg11[%c0_70, %c0_71, %c0_72] : memref<2x8x16xf32, #tpu.memory_space<vmem>>, vector<2x8x16xf32>
      tpu.vector_store %arg11[%c0_70, %c0_71, %c0_72], %95 {strides = array<i32>} : memref<2x8x16xf32, #tpu.memory_space<vmem>>, vector<2x8x16xf32>,
    } else {
    }
    %c0 = arith.constant 0 : index
    %c0_1 = arith.constant 0 : index
    %c0_2 = arith.constant 0 : index
    %3 = vector.load %arg4[%c0, %c0_1, %c0_2] : memref<1x8x32xf32, #tpu.memory_space<vmem>>, vector<1x8x32xf32>
    %4 = vector.shape_cast %3 : vector<1x8x32xf32> to vector<8x32xf32>
    %5 = arith.truncf %4 : vector<8x32xf32> to vector<8x32xbf16>
    %c0_3 = arith.constant 0 : index
    %c0_4 = arith.constant 0 : index
    %6 = vector.load %arg6[%c0_3, %c0_4] : memref<32x64xbf16, #tpu.memory_space<vmem>>, vector<32x64xbf16>
    %cst = arith.constant dense<0.000000e+00> : vector<8x64xf32>
    %7 = tpu.matmul %5, %6, %cst {dimension_numbers = #tpu.dot_dimension_numbers<[1], [0], [0], [1], [0, 0, 1, 1], [], []>} : vector<8x32xbf16>, vector<32x64xbf16>, vector<8x64xf32> -> vector<8x64xf32>
    %8 = arith.truncf %7 : vector<8x64xf32> to vector<8x64xbf16>
    %c0_5 = arith.constant 0 : index
    %c0_6 = arith.constant 0 : index
    %9 = vector.load %arg8[%c0_5, %c0_6] : memref<8x32xbf16, #tpu.memory_space<vmem>>, vector<8x16xbf16>
    %10 = vector.extract_strided_slice %8 {offsets = [0, 0], sizes = [8, 16], strides = [1, 1]} : vector<8x64xbf16> to vector<8x16xbf16>
    %11 = vector.extract_strided_slice %8 {offsets = [0, 32], sizes = [8, 16], strides = [1, 1]} : vector<8x64xbf16> to vector<8x16xbf16>
    %cst_7 = arith.constant dense<0.000000e+00> : vector<8x8xf32>
    %12 = tpu.matmul %9, %10, %cst_7 {dimension_numbers = #tpu.dot_dimension_numbers<[1], [1], [0], [0], [0, 0, 1, 0], [], []>} : vector<8x16xbf16>, vector<8x16xbf16>, vector<8x8xf32> -> vector<8x8xf32>
    %c0_8 = arith.constant 0 : index
    %c0_9 = arith.constant 0 : index
    %c0_10 = arith.constant 0 : index
    %13 = vector.load %arg9[%c0_8, %c0_9, %c0_10] : memref<2x8x1xf32, #tpu.memory_space<vmem>>, vector<1x8x1xf32>
    %14 = vector.shape_cast %13 : vector<1x8x1xf32> to vector<8x1xf32>
    %cst_11 = arith.constant dense<0xFF800000> : vector<8xf32>
    %15 = vector.multi_reduction <maximumf>, %12, %cst_11 [1] : vector<8x8xf32> to vector<8xf32>
    %16 = vector.shape_cast %15 : vector<8xf32> to vector<8x1xf32>
    %17 = arith.maximumf %14, %16 : vector<8x1xf32>
    %18 = arith.subf %14, %17 : vector<8x1xf32>
    %19 = math.exp %18 : vector<8x1xf32>
    %20 = vector.broadcast %17 : vector<8x1xf32> to vector<8x8xf32>
    %21 = arith.subf %12, %20 : vector<8x8xf32>
    %22 = math.exp %21 : vector<8x8xf32>
    %c0_12 = arith.constant 0 : index
    %c0_13 = arith.constant 0 : index
    %c0_14 = arith.constant 0 : index
    %23 = vector.load %arg10[%c0_12, %c0_13, %c0_14] : memref<2x8x1xf32, #tpu.memory_space<vmem>>, vector<1x8x1xf32>
    %24 = vector.shape_cast %23 : vector<1x8x1xf32> to vector<8x1xf32>
    %25 = arith.mulf %19, %24 : vector<8x1xf32>
    %cst_15 = arith.constant dense<0.000000e+00> : vector<8xf32>
    %26 = vector.multi_reduction <add>, %22, %cst_15 [1] : vector<8x8xf32> to vector<8xf32>
    %27 = vector.shape_cast %26 : vector<8xf32> to vector<8x1xf32>
    %28 = arith.addf %25, %27 : vector<8x1xf32>
    %c0_16 = arith.constant 0 : index
    %c0_17 = arith.constant 0 : index
    %c0_18 = arith.constant 0 : index
    %29 = vector.load %arg10[%c0_16, %c0_17, %c0_18] : memref<2x8x1xf32, #tpu.memory_space<vmem>>, vector<1x8x1xf32>
    %30 = vector.shape_cast %29 : vector<1x8x1xf32> to vector<8x1xf32>
    %31 = vector.shape_cast %28 : vector<8x1xf32> to vector<1x8x1xf32>
    tpu.vector_store %arg10[%c0_16, %c0_17, %c0_18], %31 {strides = array<i32>} : memref<2x8x1xf32, #tpu.memory_space<vmem>>, vector<1x8x1xf32>,
    %c0_19 = arith.constant 0 : index
    %c0_20 = arith.constant 0 : index
    %c0_21 = arith.constant 0 : index
    %32 = vector.load %arg11[%c0_19, %c0_20, %c0_21] : memref<2x8x16xf32, #tpu.memory_space<vmem>>, vector<1x8x16xf32>
    %33 = vector.shape_cast %32 : vector<1x8x16xf32> to vector<8x16xf32>
    %34 = vector.broadcast %19 : vector<8x1xf32> to vector<8x16xf32>
    %35 = arith.mulf %34, %33 : vector<8x16xf32>
    %36 = arith.truncf %22 : vector<8x8xf32> to vector<8x8xbf16>
    %cst_22 = arith.constant dense<0.000000e+00> : vector<8x16xf32>
    %37 = tpu.matmul %36, %11, %cst_22 {dimension_numbers = #tpu.dot_dimension_numbers<[1], [0], [0], [1], [0, 0, 1, 1], [], []>} : vector<8x8xbf16>, vector<8x16xbf16>, vector<8x16xf32> -> vector<8x16xf32>
    %38 = arith.addf %35, %37 : vector<8x16xf32>
    %c0_23 = arith.constant 0 : index
    %c0_24 = arith.constant 0 : index
    %c0_25 = arith.constant 0 : index
    %39 = vector.load %arg11[%c0_23, %c0_24, %c0_25] : memref<2x8x16xf32, #tpu.memory_space<vmem>>, vector<1x8x16xf32>
    %40 = vector.shape_cast %39 : vector<1x8x16xf32> to vector<8x16xf32>
    %41 = vector.shape_cast %38 : vector<8x16xf32> to vector<1x8x16xf32>
    tpu.vector_store %arg11[%c0_23, %c0_24, %c0_25], %41 {strides = array<i32>} : memref<2x8x16xf32, #tpu.memory_space<vmem>>, vector<1x8x16xf32>,
    %c0_26 = arith.constant 0 : index
    %c0_27 = arith.constant 0 : index
    %c0_28 = arith.constant 0 : index
    %42 = vector.load %arg9[%c0_26, %c0_27, %c0_28] : memref<2x8x1xf32, #tpu.memory_space<vmem>>, vector<1x8x1xf32>
    %43 = vector.shape_cast %42 : vector<1x8x1xf32> to vector<8x1xf32>
    %44 = vector.shape_cast %17 : vector<8x1xf32> to vector<1x8x1xf32>
    tpu.vector_store %arg9[%c0_26, %c0_27, %c0_28], %44 {strides = array<i32>} : memref<2x8x1xf32, #tpu.memory_space<vmem>>, vector<1x8x1xf32>,
    %c0_29 = arith.constant 0 : index
    %c16 = arith.constant 16 : index
    %45 = vector.load %arg8[%c0_29, %c16] : memref<8x32xbf16, #tpu.memory_space<vmem>>, vector<8x16xbf16>
    %46 = vector.extract_strided_slice %8 {offsets = [0, 16], sizes = [8, 16], strides = [1, 1]} : vector<8x64xbf16> to vector<8x16xbf16>
    %47 = vector.extract_strided_slice %8 {offsets = [0, 48], sizes = [8, 16], strides = [1, 1]} : vector<8x64xbf16> to vector<8x16xbf16>
    %cst_30 = arith.constant dense<0.000000e+00> : vector<8x8xf32>
    %48 = tpu.matmul %45, %46, %cst_30 {dimension_numbers = #tpu.dot_dimension_numbers<[1], [1], [0], [0], [0, 0, 1, 0], [], []>} : vector<8x16xbf16>, vector<8x16xbf16>, vector<8x8xf32> -> vector<8x8xf32>
    %c1 = arith.constant 1 : index
    %c0_31 = arith.constant 0 : index
    %c0_32 = arith.constant 0 : index
    %49 = vector.load %arg9[%c1, %c0_31, %c0_32] : memref<2x8x1xf32, #tpu.memory_space<vmem>>, vector<1x8x1xf32>
    %50 = vector.shape_cast %49 : vector<1x8x1xf32> to vector<8x1xf32>
    %cst_33 = arith.constant dense<0xFF800000> : vector<8xf32>
    %51 = vector.multi_reduction <maximumf>, %48, %cst_33 [1] : vector<8x8xf32> to vector<8xf32>
    %52 = vector.shape_cast %51 : vector<8xf32> to vector<8x1xf32>
    %53 = arith.maximumf %50, %52 : vector<8x1xf32>
    %54 = arith.subf %50, %53 : vector<8x1xf32>
    %55 = math.exp %54 : vector<8x1xf32>
    %56 = vector.broadcast %53 : vector<8x1xf32> to vector<8x8xf32>
    %57 = arith.subf %48, %56 : vector<8x8xf32>
    %58 = math.exp %57 : vector<8x8xf32>
    %c1_34 = arith.constant 1 : index
    %c0_35 = arith.constant 0 : index
    %c0_36 = arith.constant 0 : index
    %59 = vector.load %arg10[%c1_34, %c0_35, %c0_36] : memref<2x8x1xf32, #tpu.memory_space<vmem>>, vector<1x8x1xf32>
    %60 = vector.shape_cast %59 : vector<1x8x1xf32> to vector<8x1xf32>
    %61 = arith.mulf %55, %60 : vector<8x1xf32>
    %cst_37 = arith.constant dense<0.000000e+00> : vector<8xf32>
    %62 = vector.multi_reduction <add>, %58, %cst_37 [1] : vector<8x8xf32> to vector<8xf32>
    %63 = vector.shape_cast %62 : vector<8xf32> to vector<8x1xf32>
    %64 = arith.addf %61, %63 : vector<8x1xf32>
    %c1_38 = arith.constant 1 : index
    %c0_39 = arith.constant 0 : index
    %c0_40 = arith.constant 0 : index
    %65 = vector.load %arg10[%c1_38, %c0_39, %c0_40] : memref<2x8x1xf32, #tpu.memory_space<vmem>>, vector<1x8x1xf32>
    %66 = vector.shape_cast %65 : vector<1x8x1xf32> to vector<8x1xf32>
    %67 = vector.shape_cast %64 : vector<8x1xf32> to vector<1x8x1xf32>
    tpu.vector_store %arg10[%c1_38, %c0_39, %c0_40], %67 {strides = array<i32>} : memref<2x8x1xf32, #tpu.memory_space<vmem>>, vector<1x8x1xf32>,
    %c1_41 = arith.constant 1 : index
    %c0_42 = arith.constant 0 : index
    %c0_43 = arith.constant 0 : index
    %68 = vector.load %arg11[%c1_41, %c0_42, %c0_43] : memref<2x8x16xf32, #tpu.memory_space<vmem>>, vector<1x8x16xf32>
    %69 = vector.shape_cast %68 : vector<1x8x16xf32> to vector<8x16xf32>
    %70 = vector.broadcast %55 : vector<8x1xf32> to vector<8x16xf32>
    %71 = arith.mulf %70, %69 : vector<8x16xf32>
    %72 = arith.truncf %58 : vector<8x8xf32> to vector<8x8xbf16>
    %cst_44 = arith.constant dense<0.000000e+00> : vector<8x16xf32>
    %73 = tpu.matmul %72, %47, %cst_44 {dimension_numbers = #tpu.dot_dimension_numbers<[1], [0], [0], [1], [0, 0, 1, 1], [], []>} : vector<8x8xbf16>, vector<8x16xbf16>, vector<8x16xf32> -> vector<8x16xf32>
    %74 = arith.addf %71, %73 : vector<8x16xf32>
    %c1_45 = arith.constant 1 : index
    %c0_46 = arith.constant 0 : index
    %c0_47 = arith.constant 0 : index
    %75 = vector.load %arg11[%c1_45, %c0_46, %c0_47] : memref<2x8x16xf32, #tpu.memory_space<vmem>>, vector<1x8x16xf32>
    %76 = vector.shape_cast %75 : vector<1x8x16xf32> to vector<8x16xf32>
    %77 = vector.shape_cast %74 : vector<8x16xf32> to vector<1x8x16xf32>
    tpu.vector_store %arg11[%c1_45, %c0_46, %c0_47], %77 {strides = array<i32>} : memref<2x8x16xf32, #tpu.memory_space<vmem>>, vector<1x8x16xf32>,
    %c1_48 = arith.constant 1 : index
    %c0_49 = arith.constant 0 : index
    %c0_50 = arith.constant 0 : index
    %78 = vector.load %arg9[%c1_48, %c0_49, %c0_50] : memref<2x8x1xf32, #tpu.memory_space<vmem>>, vector<1x8x1xf32>
    %79 = vector.shape_cast %78 : vector<1x8x1xf32> to vector<8x1xf32>
    %80 = vector.shape_cast %53 : vector<8x1xf32> to vector<1x8x1xf32>
    tpu.vector_store %arg9[%c1_48, %c0_49, %c0_50], %80 {strides = array<i32>} : memref<2x8x1xf32, #tpu.memory_space<vmem>>, vector<1x8x1xf32>,
    %c0_i32_51 = arith.constant 0 : i32
    %81 = arith.cmpi eq, %arg2, %c0_i32_51 : i32
    %82 = arith.extui %81 : i1 to i32
    %c0_i32_52 = arith.constant 0 : i32
    %83 = arith.cmpi ne, %82, %c0_i32_52 : i32
    scf.if %83 {
      %c0_53 = arith.constant 0 : index
      %c0_54 = arith.constant 0 : index
      %c0_55 = arith.constant 0 : index
      %84 = vector.load %arg11[%c0_53, %c0_54, %c0_55] : memref<2x8x16xf32, #tpu.memory_space<vmem>>, vector<1x8x16xf32>
      %85 = vector.shape_cast %84 : vector<1x8x16xf32> to vector<8x16xf32>
      %c0_56 = arith.constant 0 : index
      %c0_57 = arith.constant 0 : index
      %c0_58 = arith.constant 0 : index
      %86 = vector.load %arg10[%c0_56, %c0_57, %c0_58] : memref<2x8x1xf32, #tpu.memory_space<vmem>>, vector<1x8x1xf32>
      %87 = vector.shape_cast %86 : vector<1x8x1xf32> to vector<8x1xf32>
      %88 = tpu.reciprocal %87 : vector<8x1xf32> -> vector<8x1xf32>
      %89 = vector.broadcast %88 : vector<8x1xf32> to vector<8x16xf32>
      %90 = arith.mulf %85, %89 : vector<8x16xf32>
      %c1_59 = arith.constant 1 : index
      %c0_60 = arith.constant 0 : index
      %c0_61 = arith.constant 0 : index
      %91 = vector.load %arg11[%c1_59, %c0_60, %c0_61] : memref<2x8x16xf32, #tpu.memory_space<vmem>>, vector<1x8x16xf32>
      %92 = vector.shape_cast %91 : vector<1x8x16xf32> to vector<8x16xf32>
      %c1_62 = arith.constant 1 : index
      %c0_63 = arith.constant 0 : index
      %c0_64 = arith.constant 0 : index
      %93 = vector.load %arg10[%c1_62, %c0_63, %c0_64] : memref<2x8x1xf32, #tpu.memory_space<vmem>>, vector<1x8x1xf32>
      %94 = vector.shape_cast %93 : vector<1x8x1xf32> to vector<8x1xf32>
      %95 = tpu.reciprocal %94 : vector<8x1xf32> -> vector<8x1xf32>
      %96 = vector.broadcast %95 : vector<8x1xf32> to vector<8x16xf32>
      %97 = arith.mulf %92, %96 : vector<8x16xf32>
      %98 = tpu.concatenate %90, %97 in 1 : vector<8x16xf32>, vector<8x16xf32> -> vector<8x32xf32>
      %c0_65 = arith.constant 0 : index
      %c0_66 = arith.constant 0 : index
      %c0_67 = arith.constant 0 : index
      %99 = vector.load %arg7[%c0_65, %c0_66, %c0_67] : memref<1x8x32xf32, #tpu.memory_space<vmem>>, vector<1x8x32xf32>
      %100 = vector.shape_cast %99 : vector<1x8x32xf32> to vector<8x32xf32>
      %101 = vector.shape_cast %98 : vector<8x32xf32> to vector<1x8x32xf32>
      tpu.vector_store %arg7[%c0_65, %c0_66, %c0_67], %101 {strides = array<i32>} : memref<1x8x32xf32, #tpu.memory_space<vmem>>, vector<1x8x32xf32>,
    } else {
    }
    return
  }
  func.func @transform_0(%arg0: i32, %arg1: i32, %arg2: i32) -> (i32, i32, i32) {
    %c0_i32 = arith.constant 0 : i32
    %c0_i32_0 = arith.constant 0 : i32
    return %arg0, %arg1, %c0_i32 : i32, i32, i32
  }
  func.func @transform_1(%arg0: i32, %arg1: i32, %arg2: i32) -> (i32, i32, i32) {
    %c0_i32 = arith.constant 0 : i32
    %c0_i32_0 = arith.constant 0 : i32
    return %arg0, %arg2, %c0_i32 : i32, i32, i32
  }
  func.func @transform_2(%arg0: i32, %arg1: i32, %arg2: i32) -> (i32, i32) {
    %c0_i32 = arith.constant 0 : i32
    %c0_i32_0 = arith.constant 0 : i32
    %c0_i32_1 = arith.constant 0 : i32
    return %c0_i32, %c0_i32_0 : i32, i32
  }
  func.func @transform_3(%arg0: i32, %arg1: i32, %arg2: i32) -> (i32, i32) {
    %c0_i32 = arith.constant 0 : i32
    %c0_i32_0 = arith.constant 0 : i32
    %c0_i32_1 = arith.constant 0 : i32
    return %c0_i32, %c0_i32_0 : i32, i32
  }
  func.func @transform_4(%arg0: i32, %arg1: i32, %arg2: i32) -> (i32, i32, i32) {
    %c0_i32 = arith.constant 0 : i32
    %c0_i32_0 = arith.constant 0 : i32
    return %arg0, %arg1, %c0_i32 : i32, i32, i32
  }
}

module attributes {stable_mosaic.version = 11 : i64} {
  func.func @_flash_self_attention_kernel(%arg0: i32, %arg1: i32, %arg2: i32, %arg3: memref<1x8x32xf32, #tpu.memory_space<vmem>>, %arg4: memref<1x8x32xf32, #tpu.memory_space<vmem>>, %arg5: memref<32x32xbf16, #tpu.memory_space<vmem>>, %arg6: memref<32x64xbf16, #tpu.memory_space<vmem>>, %arg7: memref<1x8x32xf32, #tpu.memory_space<vmem>>, %arg8: memref<8x32xbf16, #tpu.memory_space<vmem>>, %arg9: memref<2x8x1xf32, #tpu.memory_space<vmem>>, %arg10: memref<2x8x1xf32, #tpu.memory_space<vmem>>, %arg11: memref<2x8x16xf32, #tpu.memory_space<vmem>>) attributes {dimension_semantics = [#tpu.dimension_semantics<parallel>, #tpu.dimension_semantics<parallel>, #tpu.dimension_semantics<arbitrary>], iteration_bounds = array<i64: 2, 1, 1>, scalar_prefetch = 0 : i64, scratch_operands = 4 : i64, tpu.core_type = #tpu.core_type<tc>, window_params = [{transform_indices = @transform_0, window_bounds = array<i64: 1, 8, 32>}, {transform_indices = @transform_1, window_bounds = array<i64: 1, 8, 32>}, {pipeline_mode = #tpu.pipeline_mode<synchronous>, transform_indices = @transform_2, window_bounds = array<i64: 32, 32>}, {pipeline_mode = #tpu.pipeline_mode<synchronous>, transform_indices = @transform_3, window_bounds = array<i64: 32, 64>}, {transform_indices = @transform_4, window_bounds = array<i64: 1, 8, 32>}]} {
    %c0_i32 = arith.constant 0 : i32
    %0 = arith.cmpi eq, %arg2, %c0_i32 : i32
    %1 = arith.extui %0 : i1 to i32
    %c0_i32_0 = arith.constant 0 : i32
    %2 = arith.cmpi ne, %1, %c0_i32_0 : i32
    scf.if %2 {
      %c0_53 = arith.constant 0 : index
      %c0_54 = arith.constant 0 : index
      %c0_55 = arith.constant 0 : index
      %84 = vector.load %arg3[%c0_53, %c0_54, %c0_55] : memref<1x8x32xf32, #tpu.memory_space<vmem>>, vector<1x8x32xf32>
      %85 = vector.shape_cast %84 : vector<1x8x32xf32> to vector<8x32xf32>
      %86 = arith.truncf %85 : vector<8x32xf32> to vector<8x32xbf16>
      %c0_56 = arith.constant 0 : index
      %c0_57 = arith.constant 0 : index
      %87 = vector.load %arg5[%c0_56, %c0_57] : memref<32x32xbf16, #tpu.memory_space<vmem>>, vector<32x32xbf16>
      %cst_58 = arith.constant dense<0.000000e+00> : vector<8x32xf32>
      %88 = tpu.matmul %86, %87, %cst_58 {dimension_numbers = #tpu.dot_dimension_numbers<[1], [0], [0], [1], [0, 0, 1, 1], [], []>} : vector<8x32xbf16>, vector<32x32xbf16>, vector<8x32xf32> -> vector<8x32xf32>
      %89 = arith.truncf %88 : vector<8x32xf32> to vector<8x32xbf16>
      %c0_59 = arith.constant 0 : index
      %c0_60 = arith.constant 0 : index
      %90 = vector.load %arg8[%c0_59, %c0_60] : memref<8x32xbf16, #tpu.memory_space<vmem>>, vector<8x32xbf16>
      tpu.vector_store %arg8[%c0_59, %c0_60], %89 {strides = array<i32>} : memref<8x32xbf16, #tpu.memory_space<vmem>>, vector<8x32xbf16>,
      %cst_61 = arith.constant 0xFF800000 : f32
      %91 = vector.broadcast %cst_61 : f32 to vector<2x8x1xf32>
      %c0_62 = arith.constant 0 : index
      %c0_63 = arith.constant 0 : index
      %c0_64 = arith.constant 0 : index
      %92 = vector.load %arg9[%c0_62, %c0_63, %c0_64] : memref<2x8x1xf32, #tpu.memory_space<vmem>>, vector<2x8x1xf32>
      tpu.vector_store %arg9[%c0_62, %c0_63, %c0_64], %91 {strides = array<i32>} : memref<2x8x1xf32, #tpu.memory_space<vmem>>, vector<2x8x1xf32>,
      %cst_65 = arith.constant 0.000000e+00 : f32
      %93 = vector.broadcast %cst_65 : f32 to vector<2x8x1xf32>
      %c0_66 = arith.constant 0 : index
      %c0_67 = arith.constant 0 : index
      %c0_68 = arith.constant 0 : index
      %94 = vector.load %arg10[%c0_66, %c0_67, %c0_68] : memref<2x8x1xf32, #tpu.memory_space<vmem>>, vector<2x8x1xf32>
      tpu.vector_store %arg10[%c0_66, %c0_67, %c0_68], %93 {strides = array<i32>} : memref<2x8x1xf32, #tpu.memory_space<vmem>>, vector<2x8x1xf32>,
      %cst_69 = arith.constant 0.000000e+00 : f32
      %95 = vector.broadcast %cst_69 : f32 to vector<2x8x16xf32>
      %c0_70 = arith.constant 0 : index
      %c0_71 = arith.constant 0 : index
      %c0_72 = arith.constant 0 : index
      %96 = vector.load %arg11[%c0_70, %c0_71, %c0_72] : memref<2x8x16xf32, #tpu.memory_space<vmem>>, vector<2x8x16xf32>
      tpu.vector_store %arg11[%c0_70, %c0_71, %c0_72], %95 {strides = array<i32>} : memref<2x8x16xf32, #tpu.memory_space<vmem>>, vector<2x8x16xf32>,
    } else {
    }
    %c0 = arith.constant 0 : index
    %c0_1 = arith.constant 0 : index
    %c0_2 = arith.constant 0 : index
    %3 = vector.load %arg4[%c0, %c0_1, %c0_2] : memref<1x8x32xf32, #tpu.memory_space<vmem>>, vector<1x8x32xf32>
    %4 = vector.shape_cast %3 : vector<1x8x32xf32> to vector<8x32xf32>
    %5 = arith.truncf %4 : vector<8x32xf32> to vector<8x32xbf16>
    %c0_3 = arith.constant 0 : index
    %c0_4 = arith.constant 0 : index
    %6 = vector.load %arg6[%c0_3, %c0_4] : memref<32x64xbf16, #tpu.memory_space<vmem>>, vector<32x64xbf16>
    %cst = arith.constant dense<0.000000e+00> : vector<8x64xf32>
    %7 = tpu.matmul %5, %6, %cst {dimension_numbers = #tpu.dot_dimension_numbers<[1], [0], [0], [1], [0, 0, 1, 1], [], []>} : vector<8x32xbf16>, vector<32x64xbf16>, vector<8x64xf32> -> vector<8x64xf32>
    %8 = arith.truncf %7 : vector<8x64xf32> to vector<8x64xbf16>
    %c0_5 = arith.constant 0 : index
    %c0_6 = arith.constant 0 : index
    %9 = vector.load %arg8[%c0_5, %c0_6] : memref<8x32xbf16, #tpu.memory_space<vmem>>, vector<8x16xbf16>
    %10 = vector.extract_strided_slice %8 {offsets = [0, 0], sizes = [8, 16], strides = [1, 1]} : vector<8x64xbf16> to vector<8x16xbf16>
    %11 = vector.extract_strided_slice %8 {offsets = [0, 32], sizes = [8, 16], strides = [1, 1]} : vector<8x64xbf16> to vector<8x16xbf16>
    %cst_7 = arith.constant dense<0.000000e+00> : vector<8x8xf32>
    %12 = tpu.matmul %9, %10, %cst_7 {dimension_numbers = #tpu.dot_dimension_numbers<[1], [1], [0], [0], [0, 0, 1, 0], [], []>} : vector<8x16xbf16>, vector<8x16xbf16>, vector<8x8xf32> -> vector<8x8xf32>
    %c0_8 = arith.constant 0 : index
    %c0_9 = arith.constant 0 : index
    %c0_10 = arith.constant 0 : index
    %13 = vector.load %arg9[%c0_8, %c0_9, %c0_10] : memref<2x8x1xf32, #tpu.memory_space<vmem>>, vector<1x8x1xf32>
    %14 = vector.shape_cast %13 : vector<1x8x1xf32> to vector<8x1xf32>
    %cst_11 = arith.constant dense<0xFF800000> : vector<8xf32>
    %15 = vector.multi_reduction <maximumf>, %12, %cst_11 [1] : vector<8x8xf32> to vector<8xf32>
    %16 = vector.shape_cast %15 : vector<8xf32> to vector<8x1xf32>
    %17 = arith.maximumf %14, %16 : vector<8x1xf32>
    %18 = arith.subf %14, %17 : vector<8x1xf32>
    %19 = math.exp %18 : vector<8x1xf32>
    %20 = vector.broadcast %17 : vector<8x1xf32> to vector<8x8xf32>
    %21 = arith.subf %12, %20 : vector<8x8xf32>
    %22 = math.exp %21 : vector<8x8xf32>
    %c0_12 = arith.constant 0 : index
    %c0_13 = arith.constant 0 : index
    %c0_14 = arith.constant 0 : index
    %23 = vector.load %arg10[%c0_12, %c0_13, %c0_14] : memref<2x8x1xf32, #tpu.memory_space<vmem>>, vector<1x8x1xf32>
    %24 = vector.shape_cast %23 : vector<1x8x1xf32> to vector<8x1xf32>
    %25 = arith.mulf %19, %24 : vector<8x1xf32>
    %cst_15 = arith.constant dense<0.000000e+00> : vector<8xf32>
    %26 = vector.multi_reduction <add>, %22, %cst_15 [1] : vector<8x8xf32> to vector<8xf32>
    %27 = vector.shape_cast %26 : vector<8xf32> to vector<8x1xf32>
    %28 = arith.addf %25, %27 : vector<8x1xf32>
    %c0_16 = arith.constant 0 : index
    %c0_17 = arith.constant 0 : index
    %c0_18 = arith.constant 0 : index
    %29 = vector.load %arg10[%c0_16, %c0_17, %c0_18] : memref<2x8x1xf32, #tpu.memory_space<vmem>>, vector<1x8x1xf32>
    %30 = vector.shape_cast %29 : vector<1x8x1xf32> to vector<8x1xf32>
    %31 = vector.shape_cast %28 : vector<8x1xf32> to vector<1x8x1xf32>
    tpu.vector_store %arg10[%c0_16, %c0_17, %c0_18], %31 {strides = array<i32>} : memref<2x8x1xf32, #tpu.memory_space<vmem>>, vector<1x8x1xf32>,
    %c0_19 = arith.constant 0 : index
    %c0_20 = arith.constant 0 : index
    %c0_21 = arith.constant 0 : index
    %32 = vector.load %arg11[%c0_19, %c0_20, %c0_21] : memref<2x8x16xf32, #tpu.memory_space<vmem>>, vector<1x8x16xf32>
    %33 = vector.shape_cast %32 : vector<1x8x16xf32> to vector<8x16xf32>
    %34 = vector.broadcast %19 : vector<8x1xf32> to vector<8x16xf32>
    %35 = arith.mulf %34, %33 : vector<8x16xf32>
    %36 = arith.truncf %22 : vector<8x8xf32> to vector<8x8xbf16>
    %cst_22 = arith.constant dense<0.000000e+00> : vector<8x16xf32>
    %37 = tpu.matmul %36, %11, %cst_22 {dimension_numbers = #tpu.dot_dimension_numbers<[1], [0], [0], [1], [0, 0, 1, 1], [], []>} : vector<8x8xbf16>, vector<8x16xbf16>, vector<8x16xf32> -> vector<8x16xf32>
    %38 = arith.addf %35, %37 : vector<8x16xf32>
    %c0_23 = arith.constant 0 : index
    %c0_24 = arith.constant 0 : index
    %c0_25 = arith.constant 0 : index
    %39 = vector.load %arg11[%c0_23, %c0_24, %c0_25] : memref<2x8x16xf32, #tpu.memory_space<vmem>>, vector<1x8x16xf32>
    %40 = vector.shape_cast %39 : vector<1x8x16xf32> to vector<8x16xf32>
    %41 = vector.shape_cast %38 : vector<8x16xf32> to vector<1x8x16xf32>
    tpu.vector_store %arg11[%c0_23, %c0_24, %c0_25], %41 {strides = array<i32>} : memref<2x8x16xf32, #tpu.memory_space<vmem>>, vector<1x8x16xf32>,
    %c0_26 = arith.constant 0 : index
    %c0_27 = arith.constant 0 : index
    %c0_28 = arith.constant 0 : index
    %42 = vector.load %arg9[%c0_26, %c0_27, %c0_28] : memref<2x8x1xf32, #tpu.memory_space<vmem>>, vector<1x8x1xf32>
    %43 = vector.shape_cast %42 : vector<1x8x1xf32> to vector<8x1xf32>
    %44 = vector.shape_cast %17 : vector<8x1xf32> to vector<1x8x1xf32>
    tpu.vector_store %arg9[%c0_26, %c0_27, %c0_28], %44 {strides = array<i32>} : memref<2x8x1xf32, #tpu.memory_space<vmem>>, vector<1x8x1xf32>,
    %c0_29 = arith.constant 0 : index
    %c16 = arith.constant 16 : index
    %45 = vector.load %arg8[%c0_29, %c16] : memref<8x32xbf16, #tpu.memory_space<vmem>>, vector<8x16xbf16>
    %46 = vector.extract_strided_slice %8 {offsets = [0, 16], sizes = [8, 16], strides = [1, 1]} : vector<8x64xbf16> to vector<8x16xbf16>
    %47 = vector.extract_strided_slice %8 {offsets = [0, 48], sizes = [8, 16], strides = [1, 1]} : vector<8x64xbf16> to vector<8x16xbf16>
    %cst_30 = arith.constant dense<0.000000e+00> : vector<8x8xf32>
    %48 = tpu.matmul %45, %46, %cst_30 {dimension_numbers = #tpu.dot_dimension_numbers<[1], [1], [0], [0], [0, 0, 1, 0], [], []>} : vector<8x16xbf16>, vector<8x16xbf16>, vector<8x8xf32> -> vector<8x8xf32>
    %c1 = arith.constant 1 : index
    %c0_31 = arith.constant 0 : index
    %c0_32 = arith.constant 0 : index
    %49 = vector.load %arg9[%c1, %c0_31, %c0_32] : memref<2x8x1xf32, #tpu.memory_space<vmem>>, vector<1x8x1xf32>
    %50 = vector.shape_cast %49 : vector<1x8x1xf32> to vector<8x1xf32>
    %cst_33 = arith.constant dense<0xFF800000> : vector<8xf32>
    %51 = vector.multi_reduction <maximumf>, %48, %cst_33 [1] : vector<8x8xf32> to vector<8xf32>
    %52 = vector.shape_cast %51 : vector<8xf32> to vector<8x1xf32>
    %53 = arith.maximumf %50, %52 : vector<8x1xf32>
    %54 = arith.subf %50, %53 : vector<8x1xf32>
    %55 = math.exp %54 : vector<8x1xf32>
    %56 = vector.broadcast %53 : vector<8x1xf32> to vector<8x8xf32>
    %57 = arith.subf %48, %56 : vector<8x8xf32>
    %58 = math.exp %57 : vector<8x8xf32>
    %c1_34 = arith.constant 1 : index
    %c0_35 = arith.constant 0 : index
    %c0_36 = arith.constant 0 : index
    %59 = vector.load %arg10[%c1_34, %c0_35, %c0_36] : memref<2x8x1xf32, #tpu.memory_space<vmem>>, vector<1x8x1xf32>
    %60 = vector.shape_cast %59 : vector<1x8x1xf32> to vector<8x1xf32>
    %61 = arith.mulf %55, %60 : vector<8x1xf32>
    %cst_37 = arith.constant dense<0.000000e+00> : vector<8xf32>
    %62 = vector.multi_reduction <add>, %58, %cst_37 [1] : vector<8x8xf32> to vector<8xf32>
    %63 = vector.shape_cast %62 : vector<8xf32> to vector<8x1xf32>
    %64 = arith.addf %61, %63 : vector<8x1xf32>
    %c1_38 = arith.constant 1 : index
    %c0_39 = arith.constant 0 : index
    %c0_40 = arith.constant 0 : index
    %65 = vector.load %arg10[%c1_38, %c0_39, %c0_40] : memref<2x8x1xf32, #tpu.memory_space<vmem>>, vector<1x8x1xf32>
    %66 = vector.shape_cast %65 : vector<1x8x1xf32> to vector<8x1xf32>
    %67 = vector.shape_cast %64 : vector<8x1xf32> to vector<1x8x1xf32>
    tpu.vector_store %arg10[%c1_38, %c0_39, %c0_40], %67 {strides = array<i32>} : memref<2x8x1xf32, #tpu.memory_space<vmem>>, vector<1x8x1xf32>,
    %c1_41 = arith.constant 1 : index
    %c0_42 = arith.constant 0 : index
    %c0_43 = arith.constant 0 : index
    %68 = vector.load %arg11[%c1_41, %c0_42, %c0_43] : memref<2x8x16xf32, #tpu.memory_space<vmem>>, vector<1x8x16xf32>
    %69 = vector.shape_cast %68 : vector<1x8x16xf32> to vector<8x16xf32>
    %70 = vector.broadcast %55 : vector<8x1xf32> to vector<8x16xf32>
    %71 = arith.mulf %70, %69 : vector<8x16xf32>
    %72 = arith.truncf %58 : vector<8x8xf32> to vector<8x8xbf16>
    %cst_44 = arith.constant dense<0.000000e+00> : vector<8x16xf32>
    %73 = tpu.matmul %72, %47, %cst_44 {dimension_numbers = #tpu.dot_dimension_numbers<[1], [0], [0], [1], [0, 0, 1, 1], [], []>} : vector<8x8xbf16>, vector<8x16xbf16>, vector<8x16xf32> -> vector<8x16xf32>
    %74 = arith.addf %71, %73 : vector<8x16xf32>
    %c1_45 = arith.constant 1 : index
    %c0_46 = arith.constant 0 : index
    %c0_47 = arith.constant 0 : index
    %75 = vector.load %arg11[%c1_45, %c0_46, %c0_47] : memref<2x8x16xf32, #tpu.memory_space<vmem>>, vector<1x8x16xf32>
    %76 = vector.shape_cast %75 : vector<1x8x16xf32> to vector<8x16xf32>
    %77 = vector.shape_cast %74 : vector<8x16xf32> to vector<1x8x16xf32>
    tpu.vector_store %arg11[%c1_45, %c0_46, %c0_47], %77 {strides = array<i32>} : memref<2x8x16xf32, #tpu.memory_space<vmem>>, vector<1x8x16xf32>,
    %c1_48 = arith.constant 1 : index
    %c0_49 = arith.constant 0 : index
    %c0_50 = arith.constant 0 : index
    %78 = vector.load %arg9[%c1_48, %c0_49, %c0_50] : memref<2x8x1xf32, #tpu.memory_space<vmem>>, vector<1x8x1xf32>
    %79 = vector.shape_cast %78 : vector<1x8x1xf32> to vector<8x1xf32>
    %80 = vector.shape_cast %53 : vector<8x1xf32> to vector<1x8x1xf32>
    tpu.vector_store %arg9[%c1_48, %c0_49, %c0_50], %80 {strides = array<i32>} : memref<2x8x1xf32, #tpu.memory_space<vmem>>, vector<1x8x1xf32>,
    %c0_i32_51 = arith.constant 0 : i32
    %81 = arith.cmpi eq, %arg2, %c0_i32_51 : i32
    %82 = arith.extui %81 : i1 to i32
    %c0_i32_52 = arith.constant 0 : i32
    %83 = arith.cmpi ne, %82, %c0_i32_52 : i32
    scf.if %83 {
      %c0_53 = arith.constant 0 : index
      %c0_54 = arith.constant 0 : index
      %c0_55 = arith.constant 0 : index
      %84 = vector.load %arg11[%c0_53, %c0_54, %c0_55] : memref<2x8x16xf32, #tpu.memory_space<vmem>>, vector<1x8x16xf32>
      %85 = vector.shape_cast %84 : vector<1x8x16xf32> to vector<8x16xf32>
      %c0_56 = arith.constant 0 : index
      %c0_57 = arith.constant 0 : index
      %c0_58 = arith.constant 0 : index
      %86 = vector.load %arg10[%c0_56, %c0_57, %c0_58] : memref<2x8x1xf32, #tpu.memory_space<vmem>>, vector<1x8x1xf32>
      %87 = vector.shape_cast %86 : vector<1x8x1xf32> to vector<8x1xf32>
      %88 = tpu.reciprocal %87 : vector<8x1xf32> -> vector<8x1xf32>
      %89 = vector.broadcast %88 : vector<8x1xf32> to vector<8x16xf32>
      %90 = arith.mulf %85, %89 : vector<8x16xf32>
      %c1_59 = arith.constant 1 : index
      %c0_60 = arith.constant 0 : index
      %c0_61 = arith.constant 0 : index
      %91 = vector.load %arg11[%c1_59, %c0_60, %c0_61] : memref<2x8x16xf32, #tpu.memory_space<vmem>>, vector<1x8x16xf32>
      %92 = vector.shape_cast %91 : vector<1x8x16xf32> to vector<8x16xf32>
      %c1_62 = arith.constant 1 : index
      %c0_63 = arith.constant 0 : index
      %c0_64 = arith.constant 0 : index
      %93 = vector.load %arg10[%c1_62, %c0_63, %c0_64] : memref<2x8x1xf32, #tpu.memory_space<vmem>>, vector<1x8x1xf32>
      %94 = vector.shape_cast %93 : vector<1x8x1xf32> to vector<8x1xf32>
      %95 = tpu.reciprocal %94 : vector<8x1xf32> -> vector<8x1xf32>
      %96 = vector.broadcast %95 : vector<8x1xf32> to vector<8x16xf32>
      %97 = arith.mulf %92, %96 : vector<8x16xf32>
      %98 = tpu.concatenate %90, %97 in 1 : vector<8x16xf32>, vector<8x16xf32> -> vector<8x32xf32>
      %c0_65 = arith.constant 0 : index
      %c0_66 = arith.constant 0 : index
      %c0_67 = arith.constant 0 : index
      %99 = vector.load %arg7[%c0_65, %c0_66, %c0_67] : memref<1x8x32xf32, #tpu.memory_space<vmem>>, vector<1x8x32xf32>
      %100 = vector.shape_cast %99 : vector<1x8x32xf32> to vector<8x32xf32>
      %101 = vector.shape_cast %98 : vector<8x32xf32> to vector<1x8x32xf32>
      tpu.vector_store %arg7[%c0_65, %c0_66, %c0_67], %101 {strides = array<i32>} : memref<1x8x32xf32, #tpu.memory_space<vmem>>, vector<1x8x32xf32>,
    } else {
    }
    return
  }
  func.func @transform_0(%arg0: i32, %arg1: i32, %arg2: i32) -> (i32, i32, i32) {
    %c0_i32 = arith.constant 0 : i32
    %c0_i32_0 = arith.constant 0 : i32
    return %arg0, %arg1, %c0_i32 : i32, i32, i32
  }
  func.func @transform_1(%arg0: i32, %arg1: i32, %arg2: i32) -> (i32, i32, i32) {
    %c0_i32 = arith.constant 0 : i32
    %c0_i32_0 = arith.constant 0 : i32
    return %arg0, %arg2, %c0_i32 : i32, i32, i32
  }
  func.func @transform_2(%arg0: i32, %arg1: i32, %arg2: i32) -> (i32, i32) {
    %c0_i32 = arith.constant 0 : i32
    %c0_i32_0 = arith.constant 0 : i32
    %c0_i32_1 = arith.constant 0 : i32
    return %c0_i32, %c0_i32_0 : i32, i32
  }
  func.func @transform_3(%arg0: i32, %arg1: i32, %arg2: i32) -> (i32, i32) {
    %c0_i32 = arith.constant 0 : i32
    %c0_i32_0 = arith.constant 0 : i32
    %c0_i32_1 = arith.constant 0 : i32
    return %c0_i32, %c0_i32_0 : i32, i32
  }
  func.func @transform_4(%arg0: i32, %arg1: i32, %arg2: i32) -> (i32, i32, i32) {
    %c0_i32 = arith.constant 0 : i32
    %c0_i32_0 = arith.constant 0 : i32
    return %arg0, %arg1, %c0_i32 : i32, i32, i32
  }
}

</mosaic_0001>

<bundles_post_ra>
// kernel: tpu_custom_call.1
= control target key start
LH: loop header
LB: loop body
LE: loop exit
PB: predicated region body
PF: predicated region fallthrough
CT: control target
= control target key end

     0   :  { %s1681_s0 = inlined_call_operand.hbm [shape: f32[2,8,32], index: 0, kind: input, shape index: {}]   ;;  %s1682_s1 = inlined_call_operand.hbm [shape: f32[2,8,32], index: 1, kind: input, shape index: {}]   ;;  %s1683_s2 = inlined_call_operand.hbm [shape: bf16[32,32], index: 2, kind: input, shape index: {}]   ;;  %s1684_s3 = inlined_call_operand.hbm [shape: bf16[32,64], index: 3, kind: input, shape index: {}]   ;;  %s1685_s4 = inlined_call_operand.hbm [shape: f32[2,8,32], index: 4, kind: output, shape index: {}]  }
   0x1   :  { %1691 = sst [smem:[#allocation21_spill]] %s1683_s2 }
   0x2   :  { %1692 = sst [smem:[#allocation22_spill]] %s1684_s3 }
   0x3   :  { %9 = vsyncpa [#allocation7], 0 }
   0x4   :  { %11 = vsyncpa [#allocation7 + $0x1], 0 }
   0x5   :  { %12 = vsyncpa [#allocation10], 0 }
   0x6   :  { %14 = vsyncpa [#allocation10 + $0x1], 0 }
   0x7   :  { %15 = vsyncpa [#allocation13], 0 }
   0x8   :  { %16 = vsyncpa [#allocation8], 0 }
   0x9   :  { %18 = vsyncpa [#allocation8 + $0x1], 0  ;;  %s1342_s15 = smov 0   ;;  %s1344_s16 = smov 0  }
   0xa   :  { %s1346_s17 = smov 0   ;;  %s1348_s18 = smov 0  }
   0xb   :  { %s1350_s19 = smov 0   ;;  %s1352_s20 = smov 0  }
   0xc LB: > { %s1373_s21 = sadd.s32 4294967295, %s1300_s20   ;;  %s889_s22 = sadd.s32 4294967294, %s1300_s20   ;;  %s1300_s20 = sphi %s1352_s20, %s24_s20   ;;  %s1296_s19 = sphi %s1350_s19, %s1717_s19   ;;  %s1292_s18 = sphi %s1348_s18, %s1716_s18   ;;  %s1288_s17 = sphi %s1346_s17, %s1715_s17   ;;  %s1284_s16 = sphi %s1344_s16, %s1714_s16   ;;  %s1280_s15 = sphi %s1342_s15, %s1713_s15  }
   0xd   : > { %p65_p0 = scmp.ne.s32.totalorder %s1284_s16, %s1280_s15  ;;  %p1686_p1 = scmp.eq.s32.totalorder %s1373_s21, 0 }
   0xe   : > { %p167_p3 = scmp.eq.s32.totalorder %s889_s22, 1  ;;  %p890_p5 = scmp.ge.s32.totalorder %s1300_s20, 1 }
   0xf   : > { %p1382_p4 = por %p1686_p1, %p65_p0  ;;  %p174_p7 = scmp.lt.s32.totalorder %s1300_s20, 3 }
  0x10   : > { %p1387_p6 = por %p167_p3, %p65_p0  ;;  %s1302_s26 = smov [#allocation11]  }
  0x11   : > { %s1693_s23 = scalar_select %p1382_p4, 1, 0 }
  0x12   : > { %s1694_s24 = scalar_select %p1387_p6, 1, 0 }
  0x13   : > { %p1392_p8 = pnand %p890_p5, %p174_p7  ;;  %s186_s27 = sshll.u32 %s1302_s26, 4  ;;  %s1396_s27 = int_to_ptr.vmem [resolvable:$true] %s186_s27 }
  0x14   : > { %s1303_s29 = smov [#allocation12]   ;;  %s1697_s2 = sld [smem:[#allocation21_spill]] }
  0x15   : > { %s1695_s25 = scalar_select %p1392_p8, 1, 0 }
  0x16   : > { %p987_p9 = pneg %p1392_p8  ;;  %s199_s30 = sshll.u32 %s1303_s29, 4  ;;  %s1407_s30 = int_to_ptr.vmem [resolvable:$true] %s199_s30 }
  0x18   : > { %p1403_p11 = pnand %p987_p9, %p1686_p1 }
  0x1a   : > { %s1090_s7 = scalar_lea.hbm %s1697_s2, 256  ;;  %p1092_p13 = pneg %p1403_p11 }
  0x1b   : > { %p1091_p12 = scmp.ne.s32.totalorder %s1697_s2, %s1090_s7  ;;  %p1097_p5 = scmp.lt.u32.totalorder %s1090_s7, %s1697_s2 }
  0x1d   : > { %p1093_p0 = pnand %p1092_p13, %p1091_p12 }
  0x1f   : > { %p1094_p3 = pneg %p1093_p0 }
  0x21   : > { %p1099_p7 = pnand %p1097_p5, %p1094_p3 }
  0x23   : > { %1102 = shalt.err (!%p1099_p7)
}
  0x24   : > { %s1103_s12 = scalar_lea.vmem %s1396_s27, 256  ;;  %p1111_p2 = scmp.lt.s32.totalorder %s1396_s27, %s1396_s27 }
  0x25   : > { %p1104_p9 = scmp.ne.s32.totalorder %s1396_s27, %s1103_s12  ;;  %p1112_p12 = scmp.lt.s32.totalorder %s1103_s12, %s1103_s12 }
  0x27   : > { %p1106_p10 = pnand %p1104_p9, %p1092_p13  ;;  %p1113_p0 = por %p1112_p12, %p1111_p2 }
  0x29   : > { %p1107_p1 = pneg %p1106_p10 }
  0x2b   : > { %p1114_p6 = pnand %p1113_p0, %p1107_p1 }
  0x2d   : > { %1117 = shalt.err (!%p1114_p6)
}
  0x2e   : > { %s1304_s13 = smov 64   ;;  %s1305_s14 = smov 4  }
  0x2f   : > { %990 = dma.hbm_to_vmem [thread:$0]  (!%p1403_p11), %s1697_s2, 256, %s1396_s27, [#allocation10], %s1304_s13, %s1304_s13, %s1305_s14  }
  0x30   : > { %s1698_s3 = sld [smem:[#allocation22_spill]] }
  0x36   : > { %s1118_s6 = scalar_lea.hbm %s1698_s3, 256 }
  0x37   : > { %p1119_p2 = scmp.ne.s32.totalorder %s1698_s3, %s1118_s6  ;;  %p1125_p10 = scmp.lt.u32.totalorder %s1118_s6, %s1698_s3 }
  0x39   : > { %p1121_p1 = pnand %p1119_p2, %p1092_p13 }
  0x3b   : > { %p1122_p6 = pneg %p1121_p1 }
  0x3d   : > { %p1127_p3 = pnand %p1125_p10, %p1122_p6 }
  0x3f   : > { %1130 = shalt.err (!%p1127_p3)
}
  0x40   : > { %s1131_s27 = scalar_lea.vmem %s1407_s30, 256  ;;  %p1139_p12 = scmp.lt.s32.totalorder %s1407_s30, %s1407_s30 }
  0x41   : > { %p1132_p5 = scmp.ne.s32.totalorder %s1407_s30, %s1131_s27  ;;  %p1140_p0 = scmp.lt.s32.totalorder %s1131_s27, %s1131_s27 }
  0x43   : > { %p1134_p7 = pnand %p1132_p5, %p1092_p13  ;;  %p1141_p2 = por %p1140_p0, %p1139_p12 }
  0x45   : > { %p1135_p9 = pneg %p1134_p7 }
  0x47   : > { %p1142_p1 = pnand %p1141_p2, %p1135_p9 }
  0x49   : > { %1145 = shalt.err (!%p1142_p1)
}
  0x4a   : > { %993 = dma.hbm_to_vmem [thread:$0]  (!%p1403_p11), %s1698_s3, 256, %s1407_s30, [#allocation13], %s1304_s13, %s1304_s13, %s1305_s14  }
  0x4b   : > { %s43_s22 = sadd.s32 1, %s1296_s19  ;;  %s52_s26 = sadd.s32 1, %s1288_s17 }
  0x4c   : > { %p45_p13 = scmp.ge.s32.totalorder %s43_s22, 2  ;;  %p59_p6 = scmp.ne.s32.totalorder %s1288_s17, %s1284_s16 }
  0x4d   : > { %p60_p10 = scmp.eq.s32.totalorder %s1300_s20, 0  ;;  %p1007_p3 = scmp.lt.s32.totalorder %s1300_s20, 2 }
  0x4e   : > { %s1719_s22 = smov (%p45_p13, %s43_s22), 0  ;;  %p1700_p7 = scmp.eq.s32.totalorder %s1373_s21, 1 }
  0x4f   : > { %1699 = sst [smem:[#allocation20_spill]] %s1719_s22  ;;  %p61_p5 = por %p60_p10, %p59_p6 }
  0x50   : > { %p1471_p9 = por %p1700_p7, %p59_p6  ;;  %s47_s29 = ssub.s32 %s1296_s19, %s1719_s22 }
  0x51   : > { %s213_s5 = sand.u32 1, %s1288_s17   ;;  %p50_p12 = scmp.eq.s32.totalorder %s47_s29, 0 }
  0x52   : > { %s1701_s28 = scalar_select %p1471_p9, 1, 0 }
  0x53   : > { %s1478_s30 = sshll.u32 %s213_s5, 3  ;;  %s895_s13 = sshll.u32 %s1296_s19, 7 }
  0x54   : > { %s1482_s14 = scalar_select %p50_p12, %s1288_s17, %s52_s26  }
  0x55   : > { %s1487_s8 = scalar_lea.hbm %s1681_s0, %s895_s13  ;;  %s217_s9 = scalar_lea.vmem [#allocation6], %s1478_s30 }
  0x56   : > { %s225_s10 = sshll.u32 %s217_s9, 4  ;;  %p1492_p11 = pnand %p1007_p3, %p61_p5  ;;  %s1496_s10 = int_to_ptr.vmem [resolvable:$true] %s225_s10 }
  0x57   : > { %s1501_s26 = scalar_lea.hbm %s1682_s1, %s895_s13  ;;  %s214_s29 = scalar_lea.sflag [#allocation7], %s213_s5 }
  0x58   : > { %s1146_s6 = scalar_lea.hbm %s1487_s8, 128  ;;  %p1148_p2 = pneg %p1492_p11 }
  0x59   : > { %p1147_p0 = scmp.ne.s32.totalorder %s1487_s8, %s1146_s6  ;;  %s1151_s2 = scalar_lea.hbm %s1681_s0, 256 }
  0x5a   : > { %p1152_p6 = scmp.lt.u32.totalorder %s1487_s8, %s1681_s0  ;;  %p1153_p10 = scmp.lt.u32.totalorder %s1151_s2, %s1146_s6 }
  0x5b   : > { %p1149_p1 = pnand %p1148_p2, %p1147_p0  ;;  %p1155_p5 = scmp.lt.u32.totalorder %s1146_s6, %s1487_s8 }
  0x5c   : > { %p1154_p3 = por %p1153_p10, %p1152_p6 }
  0x5d   : > { %p1150_p13 = pneg %p1149_p1 }
  0x5e   : > { %p1156_p7 = por %p1155_p5, %p1154_p3 }
  0x60   : > { %p1157_p12 = pnand %p1156_p7, %p1150_p13 }
  0x62   : > { %1160 = shalt.err (!%p1157_p12)
}
  0x63   : > { %s1161_s5 = scalar_lea.vmem %s1496_s10, 128  ;;  %s1306_s13 = smov [#allocation6]  }
  0x64   : > { %p1162_p0 = scmp.ne.s32.totalorder %s1496_s10, %s1161_s5  ;;  %s1166_s11 = sshll.u32 %s1306_s13, 4  ;;  %s1167_s11 = int_to_ptr.vmem [resolvable:$false] %s1166_s11 }
  0x65   : > { %s1168_s3 = scalar_lea.vmem %s1167_s11, 256  ;;  %p1169_p4 = scmp.lt.s32.totalorder %s1496_s10, %s1167_s11 }
  0x66   : > { %p1164_p1 = pnand %p1162_p0, %p1148_p2  ;;  %p1170_p6 = scmp.lt.s32.totalorder %s1168_s3, %s1161_s5 }
  0x68   : > { %p1165_p9 = pneg %p1164_p1  ;;  %p1171_p10 = por %p1170_p6, %p1169_p4 }
  0x6a   : > { %p1172_p3 = pnand %p1171_p10, %p1165_p9 }
  0x6c   : > { %1175 = shalt.err (!%p1172_p3)
}
  0x6d   : > { %997 = dma.hbm_to_vmem [thread:$0]  (!%p1492_p11), %s1487_s8, 128, %s1496_s10, %s214_s29  }
  0x6e   : > { %s232_s2 = sand.u32 1, %s1300_s20   ;;  %s236_s22 = scalar_lea.vmem [#allocation9], %s1478_s30 }
  0x6f   : > { %s244_s12 = sshll.u32 %s236_s22, 4  ;;  %s233_s6 = scalar_lea.sflag [#allocation10], %s232_s2  ;;  %s245_s12 = int_to_ptr.vmem [resolvable:$true] %s244_s12 }
  0x70   : > { %s1176_s7 = scalar_lea.hbm %s1501_s26, 128  ;;  %s1181_s13 = scalar_lea.hbm %s1682_s1, 256 }
  0x71   : > { %p1177_p4 = scmp.ne.s32.totalorder %s1501_s26, %s1176_s7  ;;  %p1182_p5 = scmp.lt.u32.totalorder %s1501_s26, %s1682_s1 }
  0x72   : > { %p1183_p7 = scmp.lt.u32.totalorder %s1181_s13, %s1176_s7  ;;  %p1185_p0 = scmp.lt.u32.totalorder %s1176_s7, %s1501_s26 }
  0x73   : > { %p1179_p9 = pnand %p1177_p4, %p1148_p2 }
  0x74   : > { %p1184_p12 = por %p1183_p7, %p1182_p5 }
  0x75   : > { %p1180_p13 = pneg %p1179_p9 }
  0x76   : > { %p1186_p1 = por %p1185_p0, %p1184_p12 }
  0x78   : > { %p1187_p6 = pnand %p1186_p1, %p1180_p13 }
  0x7a   : > { %1190 = shalt.err (!%p1187_p6)
}
  0x7b   : > { %s1191_s30 = scalar_lea.vmem %s245_s12, 128  ;;  %s1307_s8 = smov [#allocation9]  }
  0x7c   : > { %p1192_p10 = scmp.ne.s32.totalorder %s245_s12, %s1191_s30  ;;  %s1196_s10 = sshll.u32 %s1307_s8, 4  ;;  %s1197_s10 = int_to_ptr.vmem [resolvable:$false] %s1196_s10 }
  0x7d   : > { %s1198_s29 = scalar_lea.vmem %s1197_s10, 256  ;;  %p1199_p9 = scmp.lt.s32.totalorder %s245_s12, %s1197_s10 }
  0x7e   : > { %p1194_p3 = pnand %p1192_p10, %p1148_p2  ;;  %p1200_p8 = scmp.lt.s32.totalorder %s1198_s29, %s1191_s30 }
  0x80   : > { %p1195_p4 = pneg %p1194_p3  ;;  %p1201_p5 = por %p1200_p8, %p1199_p9 }
  0x82   : > { %p1202_p7 = pnand %p1201_p5, %p1195_p4 }
  0x84   : > { %1205 = shalt.err (!%p1202_p7)
}
  0x85   : > { %1000 = dma.hbm_to_vmem [thread:$0]  (!%p1492_p11), %s1501_s26, 128, %s245_s12, %s233_s6  }
  0x86   : > { %p1703_p13 = scmp.ne.s32.totalorder %s1695_s25, 0 }
  0x87   : > { %s1552_s2 = sand.u32 (!%p1703_p13), 1, %s1284_s16   ;;  %p1704_p8 = scmp.ne.s32.totalorder (!%p1703_p13), %s1693_s23, 0 }
  0x88   : > { %253 = sbr.rel (%p1703_p13) target bundleno = 1426 (0x592), region = 36  ;;  %s1555_s22 = sshll.u32 (!%p1703_p13), %s1552_s2, 3 }
  0x89   : > { %s256_s7 = scalar_lea.sflag (!%p1703_p13), [#allocation7], %s1552_s2  ;;  %s259_s9 = scalar_lea.vmem (!%p1703_p13), [#allocation6], %s1555_s22 }
  0x8f   : > { %1259 = dma.done.wait (%p1704_p8), %s256_s7, 128  }
  0x90   : > { %1261 = vsyncadd (%p1704_p8), %s256_s7, 4294967168  ;;  %s264_s25 = sand.u32 1, %s1373_s21   ;;  %s268_s26 = scalar_lea.vmem [#allocation9], %s1555_s22 }
  0x91   : > { %s265_s27 = scalar_lea.sflag [#allocation10], %s264_s25 }
  0x92   : > { %1263 = dma.done.wait (%p1704_p8), %s265_s27, 128  }
  0x93   : > { %1265 = vsyncadd (%p1704_p8), %s265_s27, 4294967168  ;;  %p1705_p11 = scmp.eq.s32.totalorder %s1373_s21, 0 }
  0x95   : > { %1267 = dma.done.wait (%p1705_p11), [#allocation10], 256   ;;  %p1706_p2 = pmov %p1705_p11 }
  0x97   : > { %1269 = vsyncadd (%p1706_p2), [#allocation10], 4294967040  ;;  %p1707_p12 = pmov %p1706_p2 }
  0x98   : > { %p1708_p0 = pmov %p1706_p2 }
  0x99   : > { %1271 = dma.done.wait (%p1707_p12), [#allocation13], 256  }
  0x9a   : > { %1273 = vsyncadd (%p1708_p0), [#allocation13], 4294967040  ;;  %v1308_v0 = vmov 0.0   ;;  %vm1309_vm0 = vmmov 0   ;;  %v1073_v1 = vld [vmem:[#allocation11] sm:$0xff]   ;;  %v1074_v2 = vld [vmem:[#allocation12] sm:$0xff]  }
  0x9b   : > { %933 = vmatprep.subr.bf16.mxu0 %v1308_v0  ;;  %941 = vmatprep.subr.bf16.mxu1 %v1308_v0  ;;  %v1075_v3 = vld [vmem:[#allocation11 + $0x8] sm:$0xff]   ;;  %v1076_v4 = vld [vmem:[#allocation12 + $0x8] sm:$0xff]   ;;  %vm329_vm1 = vcmask 261120   ;;  %vm381_vm2 = vcmask 130048   ;;  %vm374_vm3 = vcmask 257024   ;;  %s1310_s21 = smov 112  }
  0x9c   : > { %937 = vmatprep.mubr.msk.bf16.mxu0 %vm1309_vm0, %v1308_v0  ;;  %945 = vmatprep.mubr.msk.bf16.mxu1 %vm1309_vm0, %v1308_v0  ;;  %v311_v5 = vld [vmem:[%s259_s9] sm:$0xff]  ;;  %v384_v6 = vld [vmem:[%s268_s26] sm:$0xff]  ;;  %382 = vst.msk [vmem:[#allocation5] sm:$0xff] %vm381_vm2, %v1308_v0  ;;  %383 = vst.msk [vmem:[#allocation5 + $0x8] sm:$0xff] %vm381_vm2, %v1308_v0  ;;  %vm376_vm4 = vcmask 7168   ;;  %v1311_v25 = vmov -inf  }
  0x9d   : > { %934 = vmatpush3.bf16.msra.mxu0 %v1073_v1  ;;  %942 = vmatpush3.bf16.msra.mxu1 %v1074_v2  ;;  %v312_v7 = vpack.c.bf16 %v311_v5, %v311_v5  ;;  %v385_v8 = vpack.c.bf16 %v384_v6, %v384_v6  ;;  %377 = vst.msk [vmem:[#allocation3] sm:$0xff] %vm376_vm4, %v1311_v25  ;;  %378 = vst.msk [vmem:[#allocation3 + $0x8] sm:$0xff] %vm376_vm4, %v1311_v25  ;;  %vm496_vm5 = vcmask 64512   ;;  %v1312_v31 = vmov 0   ;;  %s1313_s23 = smov 96   ;;  %s1314_s12 = smov 80  }
  0x9e   : > { %935 = vmatprep.subr.bf16.mxu0 %v1308_v0  ;;  %943 = vmatprep.subr.bf16.mxu1 %v1308_v0  ;;  %379 = vst.msk [vmem:[#allocation4] sm:$0xff] %vm376_vm4, %v1308_v0  ;;  %380 = vst.msk [vmem:[#allocation4 + $0x8] sm:$0xff] %vm376_vm4, %v1308_v0  ;;  %vm534_vm6 = vcmask 1043456   ;;  %s1315_s6 = smov 16   ;;  %s916_s5 = sshll.u32 %s1292_s18, 7 }
  0x9f   : > { %1071 = vset.pattern.permute.xlu0 %v1312_v31  ;;  %1072 = vset.pattern.permute.xlu1 %v1312_v31  ;;  %s305_s13 = scalar_lea.vmem [#allocation14], %s1555_s22  ;;  %s1630_s8 = scalar_lea.hbm %s1685_s4, %s916_s5 }
  0xa0   : > { %s762_s11 = sshll.u32 %s305_s13, 4  ;;  %s748_s18 = scalar_lea.sflag [#allocation8], %s1552_s2  ;;  %s1632_s11 = int_to_ptr.vmem [resolvable:$true] %s762_s11 }
  0xa1   : > { %936 = vmatpush3.bf16.msra.mxu0 %v1075_v3  ;;  %944 = vmatpush3.bf16.msra.mxu1 %v1076_v4  ;;  %s1206_s10 = scalar_lea.vmem %s1632_s11, 128  ;;  %p1709_p6 = scmp.ne.s32.totalorder %s1701_s28, 0 }
  0xa2   : > { %949 = vmatprep.subr.bf16.mxu0 %v1308_v0  ;;  %955 = vmatprep.subr.bf16.mxu1 %v1308_v0  ;;  %p1207_p1 = scmp.ne.s32.totalorder %s1632_s11, %s1206_s10  ;;  %s1316_s29 = smov [#allocation14]  }
  0xa3   : > { %s1210_s22 = sshll.u32 %s1316_s29, 4  ;;  %s1211_s22 = int_to_ptr.vmem [resolvable:$false] %s1210_s22 }
  0xa4   : > { %938 = vmatmul.mubr.msk.bf16.vlgmr.msra.gmra.mrb[0].mxu0 %vm329_vm1, %v312_v7  ;;  %946 = vmatmul.mubr.msk.bf16.vlgmr.msra.gmra.mrb[0].mxu1 %vm329_vm1, %v385_v8  ;;  %v495_v37 = vld [vmem:[#allocation3] sm:$0xff]  ;;  %v636_v41 = vld [vmem:[#allocation3 + $0x8] sm:$0xff]  ;;  %p1208_p10 = pnand %p1207_p1, %p1709_p6  ;;  %s1212_s7 = scalar_lea.vmem %s1211_s22, 256 }
  0xa5   : > { %951 = vmatprep.mubr.msk.bf16.mxu0 %vm1309_vm0, %v1308_v0  ;;  %957 = vmatprep.mubr.msk.bf16.mxu1 %vm1309_vm0, %v1308_v0  ;;  %v512_v1 = vld [vmem:[#allocation4] sm:$0xff]  ;;  %p1213_p4 = scmp.lt.s32.totalorder %s1632_s11, %s1211_s22  ;;  %p1214_p9 = scmp.lt.s32.totalorder %s1212_s7, %s1206_s10 }
  0xa6   : > { %p1209_p3 = pneg %p1208_p10 }
  0xa7   : > { %p1215_p5 = por %p1214_p9, %p1213_p4 }
  0xa9   : > { %p1216_p7 = pnand %p1215_p5, %p1209_p3 }
 0x177   : > { %v367_v9 = vpop.f32.mrb[0].mxu0  ;;  %v440_v11 = vpop.f32.mrb[0].mxu1 }
 0x178   : > { %v373_v10 = vpack.c.bf16 %v367_v9, %v367_v9  ;;  %v939_v12 = vpop.f32.mrb[1].mxu0  ;;  %v446_v13 = vpack.c.bf16 %v440_v11, %v440_v11  ;;  %v947_v14 = vpop.f32.mrb[1].mxu1  ;;  %v653_v9 = vld [vmem:[#allocation4 + $0x8] sm:$0xff] }
 0x179   : > { %v370_v15 = vpop.f32.mrb[2].mxu0  ;;  %v443_v16 = vpop.f32.mrb[2].mxu1  ;;  %v520_v14 = vld [vmem:[#allocation5] sm:$0xff] }
 0x17a   : > { %375 = vst.msk [vmem:[#allocation2] sm:$0xf] %vm374_vm3, %v373_v10  ;;  %v940_v17 = vpop.f32.mrb[3].mxu0  ;;  %v948_v18 = vpop.f32.mrb[3].mxu1  ;;  %587 = vrot.lane.b32.xlu0 %v446_v13, %s1310_s21  ;;  %v453_v19 = vsel %vm381_vm2, %v446_v13, 0 }
 0x17b   : > { %950 = vmatpush3.bf16.xpose.msra.mxu0 %v453_v19 }
 0x17c   : > { %961 = vmatprep.subr.bf16.mxu0 %v1308_v0 }
 0x181   : > { %v447_v20 = vld [vmem:[#allocation2] sm:$0xf] }
 0x182   : > { %v1077_v21 = vld [vmem:[#allocation2] ss:$0 sps:$4 sm:$0xff]   ;;  %952 = vmatmul.mubr.msk.bf16.vlgmr.msra.gmra.mrb[4].mxu0 %vm381_vm2, %v447_v20 }
 0x183   : > { %585 = vrot.lane.b32.xlu0 %v1077_v21, %s1310_s21  ;;  %963 = vmatprep.mubr.msk.bf16.mxu0 %vm1309_vm0, %v1308_v0 }
 0x1ec   : > { %v588_v22 = vpop.permute.xlu0 %587 }
 0x1ed   : > { %v593_v23 = vsel %vm381_vm2, %v588_v22, 0  ;;  %v661_v22 = vld [vmem:[#allocation5 + $0x8] sm:$0xff] }
 0x1ee   : > { %962 = vmatpush3.bf16.xpose.msra.mxu0 %v593_v23 }
 0x1f5   : > { %v586_v24 = vpop.permute.xlu0 %585 }
 0x1f6   : > { %964 = vmatmul.mubr.msk.bf16.vlgmr.msra.gmra.mrb[8].mxu0 %vm381_vm2, %v586_v24 }
 0x255   : > { %v489_v26 = vpop.f32.mrb[4].mxu0 }
 0x256   : > { %v953_v27 = vpop.f32.mrb[5].mxu0  ;;  %v497_v28 = vsel %vm496_vm5, %v489_v26, -inf }
 0x257   : > { %498 = vmax.xlane.f32.xlu1 %v497_v28  ;;  %v492_v29 = vpop.f32.mrb[6].mxu0 }
 0x258   : > { %v954_v30 = vpop.f32.mrb[7].mxu0 }
 0x2c9   : > { %v629_v32 = vpop.f32.mrb[8].mxu0 }
 0x2ca   : > { %v965_v33 = vpop.f32.mrb[9].mxu0  ;;  %v637_v34 = vsel %vm496_vm5, %v629_v32, -inf }
 0x2cb   : > { %638 = vmax.xlane.f32.xlu1 %v637_v34  ;;  %v632_v35 = vpop.f32.mrb[10].mxu0 }
 0x2cc   : > { %v966_v36 = vpop.f32.mrb[11].mxu0 }
 0x2e4   : > { %v499_v38 = vpop.xlane.xlu1 %498 }
 0x2e5   : > { %v500_v39 = vmax.f32 %v495_v37, %v499_v38 }
 0x2e7   : > { %v501_v40 = vsub.f32 %v495_v37, %v500_v39  ;;  %580 = vst.msk [vmem:[#allocation3] sm:$0xff] %vm376_vm4, %v500_v39  ;;  %506 = vperm.xlu0 %1071, %v500_v39  }
 0x2e9   : > { %v502_v62 = vmul.f32 1.442695, %v501_v40 }
 0x2eb   : > { %529 = vrot.lane.b32.xlu0 %v446_v13, %s1313_s23 }
 0x2ef   : > { %669 = vrot.lane.b32.xlu0 %v446_v13, %s1314_s12 }
 0x358   : > { %v639_v42 = vpop.xlane.xlu1 %638 }
 0x359   : > { %v640_v43 = vmax.f32 %v636_v41, %v639_v42 }
 0x35b   : > { %v641_v44 = vsub.f32 %v636_v41, %v640_v43  ;;  %719 = vst.msk [vmem:[#allocation3 + $0x8] sm:$0xff] %vm376_vm4, %v640_v43  ;;  %646 = vperm.xlu1 %1072, %v640_v43  }
 0x35d   : > { %v642_v61 = vmul.f32 1.442695, %v641_v44 }
 0x366   : > { %v507_v45 = vpop.permute.xlu0 %506 }
 0x367   : > { %v509_v46 = vsub.f32 %v489_v26, %v507_v45 }
 0x369   : > { %v510_v47 = vmul.f32 1.442695, %v509_v46 }
 0x36a   : > { %v530_v48 = vpop.permute.xlu0 %529 }
 0x36b   : > { %1078 = vpow2.f32 %v510_v47  ;;  %v536_v49 = vsel %vm534_vm6, %v530_v48, 0 }
 0x36c   : > { %956 = vmatpush3.bf16.msra.mxu1 %v536_v49 }
 0x36d   : > { %967 = vmatprep.subr.bf16.mxu1 %v1308_v0 }
 0x36e   : > { %v670_v51 = vpop.permute.xlu0 %669 }
 0x36f   : > { %v675_v53 = vsel %vm534_vm6, %v670_v51, 0 }
 0x375   : > { %v1079_v50 = vpop.eup %1078 }
 0x376   : > { %v527_v52 = vpack.c.bf16 %v1079_v50, %v1079_v50  ;;  %v514_v54 = vsel %vm496_vm5, %v1079_v50, 0.0 }
 0x378   : > { %958 = vmatmul.mubr.msk.bf16.vlgmr.msra.gmra.mrb[4].mxu1 %vm496_vm5, %v527_v52 }
 0x379   : > { %968 = vmatpush3.bf16.msra.mxu1 %v675_v53  ;;  %969 = vmatprep.mubr.msk.bf16.mxu1 %vm1309_vm0, %v1308_v0 }
 0x37f   : > { %515 = vadd.xlane.f32.xlu1 %v514_v54 }
 0x3da   : > { %v647_v55 = vpop.permute.xlu1 %646 }
 0x3db   : > { %v649_v56 = vsub.f32 %v629_v32, %v647_v55 }
 0x3dd   : > { %v650_v57 = vmul.f32 1.442695, %v649_v56 }
 0x3df   : > { %1080 = vpow2.f32 %v650_v57 }
 0x3e0   : > { %1082 = vpow2.f32 %v642_v61 }
 0x3e1   : > { %1084 = vpow2.f32 %v502_v62 }
 0x3e9   : > { %v1081_v58 = vpop.eup %1080 }
 0x3ea   : > { %v655_v59 = vsel %vm496_vm5, %v1081_v58, 0.0  ;;  %v668_v60 = vpack.c.bf16 %v1081_v58, %v1081_v58  ;;  %v1083_v63 = vpop.eup %1082 }
 0x3eb   : > { %656 = vadd.xlane.f32.xlu0 %v655_v59  ;;  %v1085_v0 = vpop.eup %1084  ;;  %v654_v10 = vmul.f32 %v1083_v63, %v653_v9 }
 0x3ec   : > { %970 = vmatmul.mubr.msk.bf16.vlgmr.msra.gmra.mrb[8].mxu1 %vm496_vm5, %v668_v60  ;;  %v513_v2 = vmul.f32 %v1085_v0, %v512_v1 }
 0x401   : > { %664 = vperm.xlu0 %1071, %v1083_v63  }
 0x405   : > { %523 = vperm.xlu0 %1071, %v1085_v0  }
 0x40c   : > { %v516_v3 = vpop.xlane.xlu1 %515 }
 0x40d   : > { %v517_v4 = vadd.f32 %v516_v3, %v513_v2 }
 0x40f   : > { %519 = vst.msk [vmem:[#allocation4] sm:$0xff] %vm376_vm4, %v517_v4 }
 0x416   : > { %v724_v17 = vld [vmem:[#allocation4] sm:$0xff] }
 0x44b   : > { %v572_v5 = vpop.f32.mrb[4].mxu1 }
 0x44c   : > { %v959_v6 = vpop.f32.mrb[5].mxu1 }
 0x44d   : > { %v575_v7 = vpop.f32.mrb[6].mxu1 }
 0x44e   : > { %v960_v8 = vpop.f32.mrb[7].mxu1 }
 0x478   : > { %v657_v11 = vpop.xlane.xlu0 %656 }
 0x479   : > { %v658_v12 = vadd.f32 %v657_v11, %v654_v10 }
 0x47b   : > { %659 = vst.msk [vmem:[#allocation4 + $0x8] sm:$0xff] %vm376_vm4, %v658_v12 }
 0x480   : > { %v665_v13 = vpop.permute.xlu0 %664 }
 0x481   : > { %v667_v23 = vmul.f32 %v665_v13, %v661_v22 }
 0x482   : > { %v733_v15 = vld [vmem:[#allocation4 + $0x8] sm:$0xff] }
 0x483   : > { %1086 = vrcp.f32 %v733_v15 }
 0x484   : > { %v524_v16 = vpop.permute.xlu0 %523  ;;  %1088 = vrcp.f32 %v724_v17 }
 0x485   : > { %v526_v18 = vmul.f32 %v524_v16, %v520_v14 }
 0x487   : > { %v578_v19 = vadd.f32 %v572_v5, %v526_v18 }
 0x489   : > { %579 = vst.msk [vmem:[#allocation5] sm:$0xff] %vm381_vm2, %v578_v19 }
 0x48d   : > { %v1087_v20 = vpop.eup %1086 }
 0x48e   : > { %737 = vperm.xlu1 %1072, %v1087_v20   ;;  %v1089_v21 = vpop.eup %1088 }
 0x490   : > { %v723_v33 = vld [vmem:[#allocation5] sm:$0xff] }
 0x492   : > { %728 = vperm.xlu1 %1072, %v1089_v21  }
 0x4bf   : > { %v711_v24 = vpop.f32.mrb[8].mxu1 }
 0x4c0   : > { %v717_v25 = vadd.f32 %v711_v24, %v667_v23  ;;  %v971_v26 = vpop.f32.mrb[9].mxu1 }
 0x4c1   : > { %v714_v27 = vpop.f32.mrb[10].mxu1 }
 0x4c2   : > { %718 = vst.msk [vmem:[#allocation5 + $0x8] sm:$0xff] %vm381_vm2, %v717_v25  ;;  %v972_v28 = vpop.f32.mrb[11].mxu1 }
 0x4c9   : > { %v732_v29 = vld [vmem:[#allocation5 + $0x8] sm:$0xff] }
 0x50d   : > { %v738_v30 = vpop.permute.xlu1 %737 }
 0x50e   : > { %v740_v31 = vmul.f32 %v738_v30, %v732_v29 }
 0x510   : > { %742 = vrot.lane.b32.xlu0 %v740_v31, %s1315_s6 }
 0x511   : > { %v729_v32 = vpop.permute.xlu1 %728 }
 0x512   : > { %v731_v34 = vmul.f32 %v729_v32, %v723_v33 }
 0x582   : > { %v743_v35 = vpop.permute.xlu0 %742 }
 0x583   : > { %v745_v36 = vsel %vm381_vm2, %v731_v34, %v743_v35 }
 0x584   : > { %746 = vst.msk [vmem:[%s305_s13] sm:$0xff] %vm329_vm1, %v745_v36 }
 0x585   : > { %1219 = shalt.err (!%p1216_p7)
}
 0x586   : > { %s1220_s2 = scalar_lea.hbm %s1630_s8, 128  ;;  %s1224_s27 = scalar_lea.hbm %s1685_s4, 256 }
 0x587   : > { %p1221_p13 = scmp.ne.s32.totalorder %s1630_s8, %s1220_s2  ;;  %p1225_p2 = scmp.lt.u32.totalorder %s1630_s8, %s1685_s4 }
 0x588   : > { %p1226_p12 = scmp.lt.u32.totalorder %s1224_s27, %s1220_s2  ;;  %p1228_p1 = scmp.lt.u32.totalorder %s1220_s2, %s1630_s8 }
 0x589   : > { %p1222_p8 = pnand %p1221_p13, %p1709_p6 }
 0x58a   : > { %p1227_p0 = por %p1226_p12, %p1225_p2 }
 0x58b   : > { %p1223_p11 = pneg %p1222_p8 }
 0x58c   : > { %p1229_p10 = por %p1228_p1, %p1227_p0 }
 0x58e   : > { %p1230_p3 = pnand %p1229_p10, %p1223_p11 }
 0x590   : > { %1233 = shalt.err (!%p1230_p3)
}
 0x591   : > { %985 = dma.vmem_to_hbm [thread:$0]  (%p1709_p6), %s1632_s11, 128, %s1630_s8, %s748_s18  }
 0x592 PF: > { %s774_s23 = sand.u32 1, %s1280_s15   ;;  %p1710_p4 = scmp.ne.s32.totalorder %s1694_s24, 0 }
 0x593   : > { %p1711_p9 = scmp.ge.s32.totalorder %s1300_s20, 2  ;;  %s775_s12 = scalar_lea.sflag [#allocation8], %s774_s23 }
 0x595   : > { %p1002_p5 = pnand %p1711_p9, %p1710_p4 }
 0x597   : > { %1275 = dma.done.wait (!%p1002_p5), %s775_s12, 128  }
 0x598   : > { %1277 = vsyncadd (!%p1002_p5), %s775_s12, 4294967168  ;;  %s24_s20 = sadd.s32 1, %s1300_s20   ;;  %s1712_s28 = sld [smem:[#allocation20_spill]] }
 0x599   : > { %p21_p7 = scmp.ge.s32.totalorder %s24_s20, 4   ;;  %s1713_s15 = smov %s1284_s16 }
 0x59a   : > { %s1714_s16 = smov %s1288_s17  ;;  %s1715_s17 = smov %s1482_s14 }
 0x59b   : > { %s1716_s18 = smov %s1296_s19  ;;  %23 = sbr.rel (!%p21_p7) target bundleno = 12 (0xc), region = 113 }
 0x59e   : > { %s1717_s19 = smov %s1712_s28 }
 0x5a2   :  { %780 = vsyncpa [#allocation7], 1 }
 0x5a3   :  { %782 = vsyncpa [#allocation7 + $0x1], 1 }
 0x5a4   :  { %783 = vsyncpa [#allocation10], 1 }
 0x5a5   :  { %785 = vsyncpa [#allocation10 + $0x1], 1 }
 0x5a6   :  { %786 = vsyncpa [#allocation13], 1 }
 0x5a7   :  { %787 = vsyncpa [#allocation8], 1 }
 0x5a8   :  { %789 = vsyncpa [#allocation8 + $0x1], 1 }

// kernel: tpu_custom_call.1
= control target key start
LH: loop header
LB: loop body
LE: loop exit
PB: predicated region body
PF: predicated region fallthrough
CT: control target
= control target key end

     0   :  { %s1681_s0 = inlined_call_operand.hbm [shape: f32[2,8,32], index: 0, kind: input, shape index: {}]   ;;  %s1682_s1 = inlined_call_operand.hbm [shape: f32[2,8,32], index: 1, kind: input, shape index: {}]   ;;  %s1683_s2 = inlined_call_operand.hbm [shape: bf16[32,32], index: 2, kind: input, shape index: {}]   ;;  %s1684_s3 = inlined_call_operand.hbm [shape: bf16[32,64], index: 3, kind: input, shape index: {}]   ;;  %s1685_s4 = inlined_call_operand.hbm [shape: f32[2,8,32], index: 4, kind: output, shape index: {}]  }
   0x1   :  { %1691 = sst [smem:[#allocation21_spill]] %s1683_s2 }
   0x2   :  { %1692 = sst [smem:[#allocation22_spill]] %s1684_s3 }
   0x3   :  { %9 = vsyncpa [#allocation7], 0 }
   0x4   :  { %11 = vsyncpa [#allocation7 + $0x1], 0 }
   0x5   :  { %12 = vsyncpa [#allocation10], 0 }
   0x6   :  { %14 = vsyncpa [#allocation10 + $0x1], 0 }
   0x7   :  { %15 = vsyncpa [#allocation13], 0 }
   0x8   :  { %16 = vsyncpa [#allocation8], 0 }
   0x9   :  { %18 = vsyncpa [#allocation8 + $0x1], 0  ;;  %s1342_s15 = smov 0   ;;  %s1344_s16 = smov 0  }
   0xa   :  { %s1346_s17 = smov 0   ;;  %s1348_s18 = smov 0  }
   0xb   :  { %s1350_s19 = smov 0   ;;  %s1352_s20 = smov 0  }
   0xc LB: > { %s1373_s21 = sadd.s32 4294967295, %s1300_s20   ;;  %s889_s22 = sadd.s32 4294967294, %s1300_s20   ;;  %s1300_s20 = sphi %s1352_s20, %s24_s20   ;;  %s1296_s19 = sphi %s1350_s19, %s1717_s19   ;;  %s1292_s18 = sphi %s1348_s18, %s1716_s18   ;;  %s1288_s17 = sphi %s1346_s17, %s1715_s17   ;;  %s1284_s16 = sphi %s1344_s16, %s1714_s16   ;;  %s1280_s15 = sphi %s1342_s15, %s1713_s15  }
   0xd   : > { %p65_p0 = scmp.ne.s32.totalorder %s1284_s16, %s1280_s15  ;;  %p1686_p1 = scmp.eq.s32.totalorder %s1373_s21, 0 }
   0xe   : > { %p167_p3 = scmp.eq.s32.totalorder %s889_s22, 1  ;;  %p890_p5 = scmp.ge.s32.totalorder %s1300_s20, 1 }
   0xf   : > { %p1382_p4 = por %p1686_p1, %p65_p0  ;;  %p174_p7 = scmp.lt.s32.totalorder %s1300_s20, 3 }
  0x10   : > { %p1387_p6 = por %p167_p3, %p65_p0  ;;  %s1302_s26 = smov [#allocation11]  }
  0x11   : > { %s1693_s23 = scalar_select %p1382_p4, 1, 0 }
  0x12   : > { %s1694_s24 = scalar_select %p1387_p6, 1, 0 }
  0x13   : > { %p1392_p8 = pnand %p890_p5, %p174_p7  ;;  %s186_s27 = sshll.u32 %s1302_s26, 4  ;;  %s1396_s27 = int_to_ptr.vmem [resolvable:$true] %s186_s27 }
  0x14   : > { %s1303_s29 = smov [#allocation12]   ;;  %s1697_s2 = sld [smem:[#allocation21_spill]] }
  0x15   : > { %s1695_s25 = scalar_select %p1392_p8, 1, 0 }
  0x16   : > { %p987_p9 = pneg %p1392_p8  ;;  %s199_s30 = sshll.u32 %s1303_s29, 4  ;;  %s1407_s30 = int_to_ptr.vmem [resolvable:$true] %s199_s30 }
  0x18   : > { %p1403_p11 = pnand %p987_p9, %p1686_p1 }
  0x1a   : > { %s1090_s7 = scalar_lea.hbm %s1697_s2, 256  ;;  %p1092_p13 = pneg %p1403_p11 }
  0x1b   : > { %p1091_p12 = scmp.ne.s32.totalorder %s1697_s2, %s1090_s7  ;;  %p1097_p5 = scmp.lt.u32.totalorder %s1090_s7, %s1697_s2 }
  0x1d   : > { %p1093_p0 = pnand %p1092_p13, %p1091_p12 }
  0x1f   : > { %p1094_p3 = pneg %p1093_p0 }
  0x21   : > { %p1099_p7 = pnand %p1097_p5, %p1094_p3 }
  0x23   : > { %1102 = shalt.err (!%p1099_p7)
}
  0x24   : > { %s1103_s12 = scalar_lea.vmem %s1396_s27, 256  ;;  %p1111_p2 = scmp.lt.s32.totalorder %s1396_s27, %s1396_s27 }
  0x25   : > { %p1104_p9 = scmp.ne.s32.totalorder %s1396_s27, %s1103_s12  ;;  %p1112_p12 = scmp.lt.s32.totalorder %s1103_s12, %s1103_s12 }
  0x27   : > { %p1106_p10 = pnand %p1104_p9, %p1092_p13  ;;  %p1113_p0 = por %p1112_p12, %p1111_p2 }
  0x29   : > { %p1107_p1 = pneg %p1106_p10 }
  0x2b   : > { %p1114_p6 = pnand %p1113_p0, %p1107_p1 }
  0x2d   : > { %1117 = shalt.err (!%p1114_p6)
}
  0x2e   : > { %s1304_s13 = smov 64   ;;  %s1305_s14 = smov 4  }
  0x2f   : > { %990 = dma.hbm_to_vmem [thread:$0]  (!%p1403_p11), %s1697_s2, 256, %s1396_s27, [#allocation10], %s1304_s13, %s1304_s13, %s1305_s14  }
  0x30   : > { %s1698_s3 = sld [smem:[#allocation22_spill]] }
  0x36   : > { %s1118_s6 = scalar_lea.hbm %s1698_s3, 256 }
  0x37   : > { %p1119_p2 = scmp.ne.s32.totalorder %s1698_s3, %s1118_s6  ;;  %p1125_p10 = scmp.lt.u32.totalorder %s1118_s6, %s1698_s3 }
  0x39   : > { %p1121_p1 = pnand %p1119_p2, %p1092_p13 }
  0x3b   : > { %p1122_p6 = pneg %p1121_p1 }
  0x3d   : > { %p1127_p3 = pnand %p1125_p10, %p1122_p6 }
  0x3f   : > { %1130 = shalt.err (!%p1127_p3)
}
  0x40   : > { %s1131_s27 = scalar_lea.vmem %s1407_s30, 256  ;;  %p1139_p12 = scmp.lt.s32.totalorder %s1407_s30, %s1407_s30 }
  0x41   : > { %p1132_p5 = scmp.ne.s32.totalorder %s1407_s30, %s1131_s27  ;;  %p1140_p0 = scmp.lt.s32.totalorder %s1131_s27, %s1131_s27 }
  0x43   : > { %p1134_p7 = pnand %p1132_p5, %p1092_p13  ;;  %p1141_p2 = por %p1140_p0, %p1139_p12 }
  0x45   : > { %p1135_p9 = pneg %p1134_p7 }
  0x47   : > { %p1142_p1 = pnand %p1141_p2, %p1135_p9 }
  0x49   : > { %1145 = shalt.err (!%p1142_p1)
}
  0x4a   : > { %993 = dma.hbm_to_vmem [thread:$0]  (!%p1403_p11), %s1698_s3, 256, %s1407_s30, [#allocation13], %s1304_s13, %s1304_s13, %s1305_s14  }
  0x4b   : > { %s43_s22 = sadd.s32 1, %s1296_s19  ;;  %s52_s26 = sadd.s32 1, %s1288_s17 }
  0x4c   : > { %p45_p13 = scmp.ge.s32.totalorder %s43_s22, 2  ;;  %p59_p6 = scmp.ne.s32.totalorder %s1288_s17, %s1284_s16 }
  0x4d   : > { %p60_p10 = scmp.eq.s32.totalorder %s1300_s20, 0  ;;  %p1007_p3 = scmp.lt.s32.totalorder %s1300_s20, 2 }
  0x4e   : > { %s1719_s22 = smov (%p45_p13, %s43_s22), 0  ;;  %p1700_p7 = scmp.eq.s32.totalorder %s1373_s21, 1 }
  0x4f   : > { %1699 = sst [smem:[#allocation20_spill]] %s1719_s22  ;;  %p61_p5 = por %p60_p10, %p59_p6 }
  0x50   : > { %p1471_p9 = por %p1700_p7, %p59_p6  ;;  %s47_s29 = ssub.s32 %s1296_s19, %s1719_s22 }
  0x51   : > { %s213_s5 = sand.u32 1, %s1288_s17   ;;  %p50_p12 = scmp.eq.s32.totalorder %s47_s29, 0 }
  0x52   : > { %s1701_s28 = scalar_select %p1471_p9, 1, 0 }
  0x53   : > { %s1478_s30 = sshll.u32 %s213_s5, 3  ;;  %s895_s13 = sshll.u32 %s1296_s19, 7 }
  0x54   : > { %s1482_s14 = scalar_select %p50_p12, %s1288_s17, %s52_s26  }
  0x55   : > { %s1487_s8 = scalar_lea.hbm %s1681_s0, %s895_s13  ;;  %s217_s9 = scalar_lea.vmem [#allocation6], %s1478_s30 }
  0x56   : > { %s225_s10 = sshll.u32 %s217_s9, 4  ;;  %p1492_p11 = pnand %p1007_p3, %p61_p5  ;;  %s1496_s10 = int_to_ptr.vmem [resolvable:$true] %s225_s10 }
  0x57   : > { %s1501_s26 = scalar_lea.hbm %s1682_s1, %s895_s13  ;;  %s214_s29 = scalar_lea.sflag [#allocation7], %s213_s5 }
  0x58   : > { %s1146_s6 = scalar_lea.hbm %s1487_s8, 128  ;;  %p1148_p2 = pneg %p1492_p11 }
  0x59   : > { %p1147_p0 = scmp.ne.s32.totalorder %s1487_s8, %s1146_s6  ;;  %s1151_s2 = scalar_lea.hbm %s1681_s0, 256 }
  0x5a   : > { %p1152_p6 = scmp.lt.u32.totalorder %s1487_s8, %s1681_s0  ;;  %p1153_p10 = scmp.lt.u32.totalorder %s1151_s2, %s1146_s6 }
  0x5b   : > { %p1149_p1 = pnand %p1148_p2, %p1147_p0  ;;  %p1155_p5 = scmp.lt.u32.totalorder %s1146_s6, %s1487_s8 }
  0x5c   : > { %p1154_p3 = por %p1153_p10, %p1152_p6 }
  0x5d   : > { %p1150_p13 = pneg %p1149_p1 }
  0x5e   : > { %p1156_p7 = por %p1155_p5, %p1154_p3 }
  0x60   : > { %p1157_p12 = pnand %p1156_p7, %p1150_p13 }
  0x62   : > { %1160 = shalt.err (!%p1157_p12)
}
  0x63   : > { %s1161_s5 = scalar_lea.vmem %s1496_s10, 128  ;;  %s1306_s13 = smov [#allocation6]  }
  0x64   : > { %p1162_p0 = scmp.ne.s32.totalorder %s1496_s10, %s1161_s5  ;;  %s1166_s11 = sshll.u32 %s1306_s13, 4  ;;  %s1167_s11 = int_to_ptr.vmem [resolvable:$false] %s1166_s11 }
  0x65   : > { %s1168_s3 = scalar_lea.vmem %s1167_s11, 256  ;;  %p1169_p4 = scmp.lt.s32.totalorder %s1496_s10, %s1167_s11 }
  0x66   : > { %p1164_p1 = pnand %p1162_p0, %p1148_p2  ;;  %p1170_p6 = scmp.lt.s32.totalorder %s1168_s3, %s1161_s5 }
  0x68   : > { %p1165_p9 = pneg %p1164_p1  ;;  %p1171_p10 = por %p1170_p6, %p1169_p4 }
  0x6a   : > { %p1172_p3 = pnand %p1171_p10, %p1165_p9 }
  0x6c   : > { %1175 = shalt.err (!%p1172_p3)
}
  0x6d   : > { %997 = dma.hbm_to_vmem [thread:$0]  (!%p1492_p11), %s1487_s8, 128, %s1496_s10, %s214_s29  }
  0x6e   : > { %s232_s2 = sand.u32 1, %s1300_s20   ;;  %s236_s22 = scalar_lea.vmem [#allocation9], %s1478_s30 }
  0x6f   : > { %s244_s12 = sshll.u32 %s236_s22, 4  ;;  %s233_s6 = scalar_lea.sflag [#allocation10], %s232_s2  ;;  %s245_s12 = int_to_ptr.vmem [resolvable:$true] %s244_s12 }
  0x70   : > { %s1176_s7 = scalar_lea.hbm %s1501_s26, 128  ;;  %s1181_s13 = scalar_lea.hbm %s1682_s1, 256 }
  0x71   : > { %p1177_p4 = scmp.ne.s32.totalorder %s1501_s26, %s1176_s7  ;;  %p1182_p5 = scmp.lt.u32.totalorder %s1501_s26, %s1682_s1 }
  0x72   : > { %p1183_p7 = scmp.lt.u32.totalorder %s1181_s13, %s1176_s7  ;;  %p1185_p0 = scmp.lt.u32.totalorder %s1176_s7, %s1501_s26 }
  0x73   : > { %p1179_p9 = pnand %p1177_p4, %p1148_p2 }
  0x74   : > { %p1184_p12 = por %p1183_p7, %p1182_p5 }
  0x75   : > { %p1180_p13 = pneg %p1179_p9 }
  0x76   : > { %p1186_p1 = por %p1185_p0, %p1184_p12 }
  0x78   : > { %p1187_p6 = pnand %p1186_p1, %p1180_p13 }
  0x7a   : > { %1190 = shalt.err (!%p1187_p6)
}
  0x7b   : > { %s1191_s30 = scalar_lea.vmem %s245_s12, 128  ;;  %s1307_s8 = smov [#allocation9]  }
  0x7c   : > { %p1192_p10 = scmp.ne.s32.totalorder %s245_s12, %s1191_s30  ;;  %s1196_s10 = sshll.u32 %s1307_s8, 4  ;;  %s1197_s10 = int_to_ptr.vmem [resolvable:$false] %s1196_s10 }
  0x7d   : > { %s1198_s29 = scalar_lea.vmem %s1197_s10, 256  ;;  %p1199_p9 = scmp.lt.s32.totalorder %s245_s12, %s1197_s10 }
  0x7e   : > { %p1194_p3 = pnand %p1192_p10, %p1148_p2  ;;  %p1200_p8 = scmp.lt.s32.totalorder %s1198_s29, %s1191_s30 }
  0x80   : > { %p1195_p4 = pneg %p1194_p3  ;;  %p1201_p5 = por %p1200_p8, %p1199_p9 }
  0x82   : > { %p1202_p7 = pnand %p1201_p5, %p1195_p4 }
  0x84   : > { %1205 = shalt.err (!%p1202_p7)
}
  0x85   : > { %1000 = dma.hbm_to_vmem [thread:$0]  (!%p1492_p11), %s1501_s26, 128, %s245_s12, %s233_s6  }
  0x86   : > { %p1703_p13 = scmp.ne.s32.totalorder %s1695_s25, 0 }
  0x87   : > { %s1552_s2 = sand.u32 (!%p1703_p13), 1, %s1284_s16   ;;  %p1704_p8 = scmp.ne.s32.totalorder (!%p1703_p13), %s1693_s23, 0 }
  0x88   : > { %253 = sbr.rel (%p1703_p13) target bundleno = 1426 (0x592), region = 36  ;;  %s1555_s22 = sshll.u32 (!%p1703_p13), %s1552_s2, 3 }
  0x89   : > { %s256_s7 = scalar_lea.sflag (!%p1703_p13), [#allocation7], %s1552_s2  ;;  %s259_s9 = scalar_lea.vmem (!%p1703_p13), [#allocation6], %s1555_s22 }
  0x8f   : > { %1259 = dma.done.wait (%p1704_p8), %s256_s7, 128  }
  0x90   : > { %1261 = vsyncadd (%p1704_p8), %s256_s7, 4294967168  ;;  %s264_s25 = sand.u32 1, %s1373_s21   ;;  %s268_s26 = scalar_lea.vmem [#allocation9], %s1555_s22 }
  0x91   : > { %s265_s27 = scalar_lea.sflag [#allocation10], %s264_s25 }
  0x92   : > { %1263 = dma.done.wait (%p1704_p8), %s265_s27, 128  }
  0x93   : > { %1265 = vsyncadd (%p1704_p8), %s265_s27, 4294967168  ;;  %p1705_p11 = scmp.eq.s32.totalorder %s1373_s21, 0 }
  0x95   : > { %1267 = dma.done.wait (%p1705_p11), [#allocation10], 256   ;;  %p1706_p2 = pmov %p1705_p11 }
  0x97   : > { %1269 = vsyncadd (%p1706_p2), [#allocation10], 4294967040  ;;  %p1707_p12 = pmov %p1706_p2 }
  0x98   : > { %p1708_p0 = pmov %p1706_p2 }
  0x99   : > { %1271 = dma.done.wait (%p1707_p12), [#allocation13], 256  }
  0x9a   : > { %1273 = vsyncadd (%p1708_p0), [#allocation13], 4294967040  ;;  %v1308_v0 = vmov 0.0   ;;  %vm1309_vm0 = vmmov 0   ;;  %v1073_v1 = vld [vmem:[#allocation11] sm:$0xff]   ;;  %v1074_v2 = vld [vmem:[#allocation12] sm:$0xff]  }
  0x9b   : > { %933 = vmatprep.subr.bf16.mxu0 %v1308_v0  ;;  %941 = vmatprep.subr.bf16.mxu1 %v1308_v0  ;;  %v1075_v3 = vld [vmem:[#allocation11 + $0x8] sm:$0xff]   ;;  %v1076_v4 = vld [vmem:[#allocation12 + $0x8] sm:$0xff]   ;;  %vm329_vm1 = vcmask 261120   ;;  %vm381_vm2 = vcmask 130048   ;;  %vm374_vm3 = vcmask 257024   ;;  %s1310_s21 = smov 112  }
  0x9c   : > { %937 = vmatprep.mubr.msk.bf16.mxu0 %vm1309_vm0, %v1308_v0  ;;  %945 = vmatprep.mubr.msk.bf16.mxu1 %vm1309_vm0, %v1308_v0  ;;  %v311_v5 = vld [vmem:[%s259_s9] sm:$0xff]  ;;  %v384_v6 = vld [vmem:[%s268_s26] sm:$0xff]  ;;  %382 = vst.msk [vmem:[#allocation5] sm:$0xff] %vm381_vm2, %v1308_v0  ;;  %383 = vst.msk [vmem:[#allocation5 + $0x8] sm:$0xff] %vm381_vm2, %v1308_v0  ;;  %vm376_vm4 = vcmask 7168   ;;  %v1311_v25 = vmov -inf  }
  0x9d   : > { %934 = vmatpush3.bf16.msra.mxu0 %v1073_v1  ;;  %942 = vmatpush3.bf16.msra.mxu1 %v1074_v2  ;;  %v312_v7 = vpack.c.bf16 %v311_v5, %v311_v5  ;;  %v385_v8 = vpack.c.bf16 %v384_v6, %v384_v6  ;;  %377 = vst.msk [vmem:[#allocation3] sm:$0xff] %vm376_vm4, %v1311_v25  ;;  %378 = vst.msk [vmem:[#allocation3 + $0x8] sm:$0xff] %vm376_vm4, %v1311_v25  ;;  %vm496_vm5 = vcmask 64512   ;;  %v1312_v31 = vmov 0   ;;  %s1313_s23 = smov 96   ;;  %s1314_s12 = smov 80  }
  0x9e   : > { %935 = vmatprep.subr.bf16.mxu0 %v1308_v0  ;;  %943 = vmatprep.subr.bf16.mxu1 %v1308_v0  ;;  %379 = vst.msk [vmem:[#allocation4] sm:$0xff] %vm376_vm4, %v1308_v0  ;;  %380 = vst.msk [vmem:[#allocation4 + $0x8] sm:$0xff] %vm376_vm4, %v1308_v0  ;;  %vm534_vm6 = vcmask 1043456   ;;  %s1315_s6 = smov 16   ;;  %s916_s5 = sshll.u32 %s1292_s18, 7 }
  0x9f   : > { %1071 = vset.pattern.permute.xlu0 %v1312_v31  ;;  %1072 = vset.pattern.permute.xlu1 %v1312_v31  ;;  %s305_s13 = scalar_lea.vmem [#allocation14], %s1555_s22  ;;  %s1630_s8 = scalar_lea.hbm %s1685_s4, %s916_s5 }
  0xa0   : > { %s762_s11 = sshll.u32 %s305_s13, 4  ;;  %s748_s18 = scalar_lea.sflag [#allocation8], %s1552_s2  ;;  %s1632_s11 = int_to_ptr.vmem [resolvable:$true] %s762_s11 }
  0xa1   : > { %936 = vmatpush3.bf16.msra.mxu0 %v1075_v3  ;;  %944 = vmatpush3.bf16.msra.mxu1 %v1076_v4  ;;  %s1206_s10 = scalar_lea.vmem %s1632_s11, 128  ;;  %p1709_p6 = scmp.ne.s32.totalorder %s1701_s28, 0 }
  0xa2   : > { %949 = vmatprep.subr.bf16.mxu0 %v1308_v0  ;;  %955 = vmatprep.subr.bf16.mxu1 %v1308_v0  ;;  %p1207_p1 = scmp.ne.s32.totalorder %s1632_s11, %s1206_s10  ;;  %s1316_s29 = smov [#allocation14]  }
  0xa3   : > { %s1210_s22 = sshll.u32 %s1316_s29, 4  ;;  %s1211_s22 = int_to_ptr.vmem [resolvable:$false] %s1210_s22 }
  0xa4   : > { %938 = vmatmul.mubr.msk.bf16.vlgmr.msra.gmra.mrb[0].mxu0 %vm329_vm1, %v312_v7  ;;  %946 = vmatmul.mubr.msk.bf16.vlgmr.msra.gmra.mrb[0].mxu1 %vm329_vm1, %v385_v8  ;;  %v495_v37 = vld [vmem:[#allocation3] sm:$0xff]  ;;  %v636_v41 = vld [vmem:[#allocation3 + $0x8] sm:$0xff]  ;;  %p1208_p10 = pnand %p1207_p1, %p1709_p6  ;;  %s1212_s7 = scalar_lea.vmem %s1211_s22, 256 }
  0xa5   : > { %951 = vmatprep.mubr.msk.bf16.mxu0 %vm1309_vm0, %v1308_v0  ;;  %957 = vmatprep.mubr.msk.bf16.mxu1 %vm1309_vm0, %v1308_v0  ;;  %v512_v1 = vld [vmem:[#allocation4] sm:$0xff]  ;;  %p1213_p4 = scmp.lt.s32.totalorder %s1632_s11, %s1211_s22  ;;  %p1214_p9 = scmp.lt.s32.totalorder %s1212_s7, %s1206_s10 }
  0xa6   : > { %p1209_p3 = pneg %p1208_p10 }
  0xa7   : > { %p1215_p5 = por %p1214_p9, %p1213_p4 }
  0xa9   : > { %p1216_p7 = pnand %p1215_p5, %p1209_p3 }
 0x177   : > { %v367_v9 = vpop.f32.mrb[0].mxu0  ;;  %v440_v11 = vpop.f32.mrb[0].mxu1 }
 0x178   : > { %v373_v10 = vpack.c.bf16 %v367_v9, %v367_v9  ;;  %v939_v12 = vpop.f32.mrb[1].mxu0  ;;  %v446_v13 = vpack.c.bf16 %v440_v11, %v440_v11  ;;  %v947_v14 = vpop.f32.mrb[1].mxu1  ;;  %v653_v9 = vld [vmem:[#allocation4 + $0x8] sm:$0xff] }
 0x179   : > { %v370_v15 = vpop.f32.mrb[2].mxu0  ;;  %v443_v16 = vpop.f32.mrb[2].mxu1  ;;  %v520_v14 = vld [vmem:[#allocation5] sm:$0xff] }
 0x17a   : > { %375 = vst.msk [vmem:[#allocation2] sm:$0xf] %vm374_vm3, %v373_v10  ;;  %v940_v17 = vpop.f32.mrb[3].mxu0  ;;  %v948_v18 = vpop.f32.mrb[3].mxu1  ;;  %587 = vrot.lane.b32.xlu0 %v446_v13, %s1310_s21  ;;  %v453_v19 = vsel %vm381_vm2, %v446_v13, 0 }
 0x17b   : > { %950 = vmatpush3.bf16.xpose.msra.mxu0 %v453_v19 }
 0x17c   : > { %961 = vmatprep.subr.bf16.mxu0 %v1308_v0 }
 0x181   : > { %v447_v20 = vld [vmem:[#allocation2] sm:$0xf] }
 0x182   : > { %v1077_v21 = vld [vmem:[#allocation2] ss:$0 sps:$4 sm:$0xff]   ;;  %952 = vmatmul.mubr.msk.bf16.vlgmr.msra.gmra.mrb[4].mxu0 %vm381_vm2, %v447_v20 }
 0x183   : > { %585 = vrot.lane.b32.xlu0 %v1077_v21, %s1310_s21  ;;  %963 = vmatprep.mubr.msk.bf16.mxu0 %vm1309_vm0, %v1308_v0 }
 0x1ec   : > { %v588_v22 = vpop.permute.xlu0 %587 }
 0x1ed   : > { %v593_v23 = vsel %vm381_vm2, %v588_v22, 0  ;;  %v661_v22 = vld [vmem:[#allocation5 + $0x8] sm:$0xff] }
 0x1ee   : > { %962 = vmatpush3.bf16.xpose.msra.mxu0 %v593_v23 }
 0x1f5   : > { %v586_v24 = vpop.permute.xlu0 %585 }
 0x1f6   : > { %964 = vmatmul.mubr.msk.bf16.vlgmr.msra.gmra.mrb[8].mxu0 %vm381_vm2, %v586_v24 }
 0x255   : > { %v489_v26 = vpop.f32.mrb[4].mxu0 }
 0x256   : > { %v953_v27 = vpop.f32.mrb[5].mxu0  ;;  %v497_v28 = vsel %vm496_vm5, %v489_v26, -inf }
 0x257   : > { %498 = vmax.xlane.f32.xlu1 %v497_v28  ;;  %v492_v29 = vpop.f32.mrb[6].mxu0 }
 0x258   : > { %v954_v30 = vpop.f32.mrb[7].mxu0 }
 0x2c9   : > { %v629_v32 = vpop.f32.mrb[8].mxu0 }
 0x2ca   : > { %v965_v33 = vpop.f32.mrb[9].mxu0  ;;  %v637_v34 = vsel %vm496_vm5, %v629_v32, -inf }
 0x2cb   : > { %638 = vmax.xlane.f32.xlu1 %v637_v34  ;;  %v632_v35 = vpop.f32.mrb[10].mxu0 }
 0x2cc   : > { %v966_v36 = vpop.f32.mrb[11].mxu0 }
 0x2e4   : > { %v499_v38 = vpop.xlane.xlu1 %498 }
 0x2e5   : > { %v500_v39 = vmax.f32 %v495_v37, %v499_v38 }
 0x2e7   : > { %v501_v40 = vsub.f32 %v495_v37, %v500_v39  ;;  %580 = vst.msk [vmem:[#allocation3] sm:$0xff] %vm376_vm4, %v500_v39  ;;  %506 = vperm.xlu0 %1071, %v500_v39  }
 0x2e9   : > { %v502_v62 = vmul.f32 1.442695, %v501_v40 }
 0x2eb   : > { %529 = vrot.lane.b32.xlu0 %v446_v13, %s1313_s23 }
 0x2ef   : > { %669 = vrot.lane.b32.xlu0 %v446_v13, %s1314_s12 }
 0x358   : > { %v639_v42 = vpop.xlane.xlu1 %638 }
 0x359   : > { %v640_v43 = vmax.f32 %v636_v41, %v639_v42 }
 0x35b   : > { %v641_v44 = vsub.f32 %v636_v41, %v640_v43  ;;  %719 = vst.msk [vmem:[#allocation3 + $0x8] sm:$0xff] %vm376_vm4, %v640_v43  ;;  %646 = vperm.xlu1 %1072, %v640_v43  }
 0x35d   : > { %v642_v61 = vmul.f32 1.442695, %v641_v44 }
 0x366   : > { %v507_v45 = vpop.permute.xlu0 %506 }
 0x367   : > { %v509_v46 = vsub.f32 %v489_v26, %v507_v45 }
 0x369   : > { %v510_v47 = vmul.f32 1.442695, %v509_v46 }
 0x36a   : > { %v530_v48 = vpop.permute.xlu0 %529 }
 0x36b   : > { %1078 = vpow2.f32 %v510_v47  ;;  %v536_v49 = vsel %vm534_vm6, %v530_v48, 0 }
 0x36c   : > { %956 = vmatpush3.bf16.msra.mxu1 %v536_v49 }
 0x36d   : > { %967 = vmatprep.subr.bf16.mxu1 %v1308_v0 }
 0x36e   : > { %v670_v51 = vpop.permute.xlu0 %669 }
 0x36f   : > { %v675_v53 = vsel %vm534_vm6, %v670_v51, 0 }
 0x375   : > { %v1079_v50 = vpop.eup %1078 }
 0x376   : > { %v527_v52 = vpack.c.bf16 %v1079_v50, %v1079_v50  ;;  %v514_v54 = vsel %vm496_vm5, %v1079_v50, 0.0 }
 0x378   : > { %958 = vmatmul.mubr.msk.bf16.vlgmr.msra.gmra.mrb[4].mxu1 %vm496_vm5, %v527_v52 }
 0x379   : > { %968 = vmatpush3.bf16.msra.mxu1 %v675_v53  ;;  %969 = vmatprep.mubr.msk.bf16.mxu1 %vm1309_vm0, %v1308_v0 }
 0x37f   : > { %515 = vadd.xlane.f32.xlu1 %v514_v54 }
 0x3da   : > { %v647_v55 = vpop.permute.xlu1 %646 }
 0x3db   : > { %v649_v56 = vsub.f32 %v629_v32, %v647_v55 }
 0x3dd   : > { %v650_v57 = vmul.f32 1.442695, %v649_v56 }
 0x3df   : > { %1080 = vpow2.f32 %v650_v57 }
 0x3e0   : > { %1082 = vpow2.f32 %v642_v61 }
 0x3e1   : > { %1084 = vpow2.f32 %v502_v62 }
 0x3e9   : > { %v1081_v58 = vpop.eup %1080 }
 0x3ea   : > { %v655_v59 = vsel %vm496_vm5, %v1081_v58, 0.0  ;;  %v668_v60 = vpack.c.bf16 %v1081_v58, %v1081_v58  ;;  %v1083_v63 = vpop.eup %1082 }
 0x3eb   : > { %656 = vadd.xlane.f32.xlu0 %v655_v59  ;;  %v1085_v0 = vpop.eup %1084  ;;  %v654_v10 = vmul.f32 %v1083_v63, %v653_v9 }
 0x3ec   : > { %970 = vmatmul.mubr.msk.bf16.vlgmr.msra.gmra.mrb[8].mxu1 %vm496_vm5, %v668_v60  ;;  %v513_v2 = vmul.f32 %v1085_v0, %v512_v1 }
 0x401   : > { %664 = vperm.xlu0 %1071, %v1083_v63  }
 0x405   : > { %523 = vperm.xlu0 %1071, %v1085_v0  }
 0x40c   : > { %v516_v3 = vpop.xlane.xlu1 %515 }
 0x40d   : > { %v517_v4 = vadd.f32 %v516_v3, %v513_v2 }
 0x40f   : > { %519 = vst.msk [vmem:[#allocation4] sm:$0xff] %vm376_vm4, %v517_v4 }
 0x416   : > { %v724_v17 = vld [vmem:[#allocation4] sm:$0xff] }
 0x44b   : > { %v572_v5 = vpop.f32.mrb[4].mxu1 }
 0x44c   : > { %v959_v6 = vpop.f32.mrb[5].mxu1 }
 0x44d   : > { %v575_v7 = vpop.f32.mrb[6].mxu1 }
 0x44e   : > { %v960_v8 = vpop.f32.mrb[7].mxu1 }
 0x478   : > { %v657_v11 = vpop.xlane.xlu0 %656 }
 0x479   : > { %v658_v12 = vadd.f32 %v657_v11, %v654_v10 }
 0x47b   : > { %659 = vst.msk [vmem:[#allocation4 + $0x8] sm:$0xff] %vm376_vm4, %v658_v12 }
 0x480   : > { %v665_v13 = vpop.permute.xlu0 %664 }
 0x481   : > { %v667_v23 = vmul.f32 %v665_v13, %v661_v22 }
 0x482   : > { %v733_v15 = vld [vmem:[#allocation4 + $0x8] sm:$0xff] }
 0x483   : > { %1086 = vrcp.f32 %v733_v15 }
 0x484   : > { %v524_v16 = vpop.permute.xlu0 %523  ;;  %1088 = vrcp.f32 %v724_v17 }
 0x485   : > { %v526_v18 = vmul.f32 %v524_v16, %v520_v14 }
 0x487   : > { %v578_v19 = vadd.f32 %v572_v5, %v526_v18 }
 0x489   : > { %579 = vst.msk [vmem:[#allocation5] sm:$0xff] %vm381_vm2, %v578_v19 }
 0x48d   : > { %v1087_v20 = vpop.eup %1086 }
 0x48e   : > { %737 = vperm.xlu1 %1072, %v1087_v20   ;;  %v1089_v21 = vpop.eup %1088 }
 0x490   : > { %v723_v33 = vld [vmem:[#allocation5] sm:$0xff] }
 0x492   : > { %728 = vperm.xlu1 %1072, %v1089_v21  }
 0x4bf   : > { %v711_v24 = vpop.f32.mrb[8].mxu1 }
 0x4c0   : > { %v717_v25 = vadd.f32 %v711_v24, %v667_v23  ;;  %v971_v26 = vpop.f32.mrb[9].mxu1 }
 0x4c1   : > { %v714_v27 = vpop.f32.mrb[10].mxu1 }
 0x4c2   : > { %718 = vst.msk [vmem:[#allocation5 + $0x8] sm:$0xff] %vm381_vm2, %v717_v25  ;;  %v972_v28 = vpop.f32.mrb[11].mxu1 }
 0x4c9   : > { %v732_v29 = vld [vmem:[#allocation5 + $0x8] sm:$0xff] }
 0x50d   : > { %v738_v30 = vpop.permute.xlu1 %737 }
 0x50e   : > { %v740_v31 = vmul.f32 %v738_v30, %v732_v29 }
 0x510   : > { %742 = vrot.lane.b32.xlu0 %v740_v31, %s1315_s6 }
 0x511   : > { %v729_v32 = vpop.permute.xlu1 %728 }
 0x512   : > { %v731_v34 = vmul.f32 %v729_v32, %v723_v33 }
 0x582   : > { %v743_v35 = vpop.permute.xlu0 %742 }
 0x583   : > { %v745_v36 = vsel %vm381_vm2, %v731_v34, %v743_v35 }
 0x584   : > { %746 = vst.msk [vmem:[%s305_s13] sm:$0xff] %vm329_vm1, %v745_v36 }
 0x585   : > { %1219 = shalt.err (!%p1216_p7)
}
 0x586   : > { %s1220_s2 = scalar_lea.hbm %s1630_s8, 128  ;;  %s1224_s27 = scalar_lea.hbm %s1685_s4, 256 }
 0x587   : > { %p1221_p13 = scmp.ne.s32.totalorder %s1630_s8, %s1220_s2  ;;  %p1225_p2 = scmp.lt.u32.totalorder %s1630_s8, %s1685_s4 }
 0x588   : > { %p1226_p12 = scmp.lt.u32.totalorder %s1224_s27, %s1220_s2  ;;  %p1228_p1 = scmp.lt.u32.totalorder %s1220_s2, %s1630_s8 }
 0x589   : > { %p1222_p8 = pnand %p1221_p13, %p1709_p6 }
 0x58a   : > { %p1227_p0 = por %p1226_p12, %p1225_p2 }
 0x58b   : > { %p1223_p11 = pneg %p1222_p8 }
 0x58c   : > { %p1229_p10 = por %p1228_p1, %p1227_p0 }
 0x58e   : > { %p1230_p3 = pnand %p1229_p10, %p1223_p11 }
 0x590   : > { %1233 = shalt.err (!%p1230_p3)
}
 0x591   : > { %985 = dma.vmem_to_hbm [thread:$0]  (%p1709_p6), %s1632_s11, 128, %s1630_s8, %s748_s18  }
 0x592 PF: > { %s774_s23 = sand.u32 1, %s1280_s15   ;;  %p1710_p4 = scmp.ne.s32.totalorder %s1694_s24, 0 }
 0x593   : > { %p1711_p9 = scmp.ge.s32.totalorder %s1300_s20, 2  ;;  %s775_s12 = scalar_lea.sflag [#allocation8], %s774_s23 }
 0x595   : > { %p1002_p5 = pnand %p1711_p9, %p1710_p4 }
 0x597   : > { %1275 = dma.done.wait (!%p1002_p5), %s775_s12, 128  }
 0x598   : > { %1277 = vsyncadd (!%p1002_p5), %s775_s12, 4294967168  ;;  %s24_s20 = sadd.s32 1, %s1300_s20   ;;  %s1712_s28 = sld [smem:[#allocation20_spill]] }
 0x599   : > { %p21_p7 = scmp.ge.s32.totalorder %s24_s20, 4   ;;  %s1713_s15 = smov %s1284_s16 }
 0x59a   : > { %s1714_s16 = smov %s1288_s17  ;;  %s1715_s17 = smov %s1482_s14 }
 0x59b   : > { %s1716_s18 = smov %s1296_s19  ;;  %23 = sbr.rel (!%p21_p7) target bundleno = 12 (0xc), region = 113 }
 0x59e   : > { %s1717_s19 = smov %s1712_s28 }
 0x5a2   :  { %780 = vsyncpa [#allocation7], 1 }
 0x5a3   :  { %782 = vsyncpa [#allocation7 + $0x1], 1 }
 0x5a4   :  { %783 = vsyncpa [#allocation10], 1 }
 0x5a5   :  { %785 = vsyncpa [#allocation10 + $0x1], 1 }
 0x5a6   :  { %786 = vsyncpa [#allocation13], 1 }
 0x5a7   :  { %787 = vsyncpa [#allocation8], 1 }
 0x5a8   :  { %789 = vsyncpa [#allocation8 + $0x1], 1 }

</bundles_post_ra>
